<compile_context>
chip_gen: v6e
topology: v6e:2x2x1
jax: 0.10.0
libtpu: 0.0.40
codegen_flags: <defaults>
</compile_context>

<pallas_src>
import functools

import jax
import jax.numpy as jnp
from jax import lax
from jax.experimental import pallas as pl
from jax.experimental.pallas import tpu as pltpu


def _lstm_mlp_kernel(x_ref,            # (T*BT, D)  time-major rows for this batch tile
                     w_ih_t_ref,       # (D, 4H)
                     w_hh_t_ref,       # (H, 4H)
                     b_lstm_ref,       # (1, 4H)    (= b_ih + b_hh)
                     w1_ref, b1_ref,   # (H, 256), (1, 256)
                     w2_ref, b2_ref,   # (256, 256) bf16, (1, 256) f32
                     w3_ref, b3_ref,   # (256, 128) bf16, (1, 128) f32
                     wo_t_ref, bo_ref, # (C, 128),  (1, C)
                     out_ref,          # (BT, C)
                     *, seq_len):
    T = seq_len
    BT = x_ref.shape[0] // T
    H = w_hh_t_ref.shape[0]
    C = out_ref.shape[1]

    w_ih_t = w_ih_t_ref[...]
    w_hh_t = w_hh_t_ref[...]

    # Hoisted input projection for every timestep: one (T*BT, D) @ (D, 4H)
    # matmul + bias, removed from the serial per-step dependency chain.
    xw = jnp.dot(x_ref[...], w_ih_t,
                 preferred_element_type=jnp.float32) + b_lstm_ref[...]   # (T*BT, 4H)

    # Recurrent weight rows broadcast once (hoisted); per-step h @ W_hh becomes
    # H VPU FMAs instead of an MXU push/pop.
    whh_rows = [jnp.broadcast_to(w_hh_t[r:r + 1, :], (BT, 4 * H))
                for r in range(H)]

    # R1: single-sigmoid gate activation.  Gate order [i, f, g, o]; only the
    # g lanes (2H:3H) need tanh, via tanh(x) = 2*sigmoid(2x) - 1.  The
    # pre-multiplier and the affine fixup multiplier are the same vector.
    lane = lax.broadcasted_iota(jnp.int32, (BT, 4 * H), 1)
    is_g = (lane >= 2 * H) & (lane < 3 * H)
    g_mul = jnp.where(is_g, 2.0, 1.0).astype(jnp.float32)    # hoisted
    g_sub = jnp.where(is_g, 1.0, 0.0).astype(jnp.float32)    # hoisted

    h = jnp.zeros((BT, H), jnp.float32)
    c = jnp.zeros((BT, H), jnp.float32)

    # Fully unrolled recurrence (T static): static sublane-aligned slices of xw
    # and cross-step scheduling visibility for the LLO scheduler.
    for t in range(T):
        pre = xw[t * BT:(t + 1) * BT, :]                      # (BT, 4H)
        for r in range(H):
            pre = pre + h[:, r:r + 1] * whh_rows[r]           # VPU FMAs
        # R1 + R2: one exp + one approx reciprocal per step (EUP slot only).
        e = jnp.exp(-(pre * g_mul))
        sg = pl.reciprocal(1.0 + e, approx=True)
        act = sg * g_mul - g_sub                              # [i,f,g,o] activations
        i = act[:, 0 * H:1 * H]
        f = act[:, 1 * H:2 * H]
        g = act[:, 2 * H:3 * H]
        o = act[:, 3 * H:4 * H]
        c = f * c + i * g
        # R2: tanh(c) = 2*sigmoid(2c) - 1 via exp + approx reciprocal (EUP).
        ec = jnp.exp(-2.0 * c)
        h = o * (2.0 * pl.reciprocal(1.0 + ec, approx=True) - 1.0)

    # hn.view(-1, hidden) -> relu -> MLP head.
    hr = jnp.maximum(h, 0.0)

    # R4: first head layer (K=H=2) as VPU FMAs against broadcast w1 rows
    # (one-time broadcasts; no MXU push/drain on the dependent tail).
    n1 = w1_ref.shape[1]
    a1 = jnp.broadcast_to(b1_ref[...], (BT, n1))
    for r in range(H):
        a1 = a1 + hr[:, r:r + 1] * jnp.broadcast_to(w1_ref[r:r + 1, :], (BT, n1))
    a1 = jnp.maximum(a1, 0.0)

    # R6: big head matmuls with bf16 inputs and f32 accumulation.
    a2 = jnp.dot(a1.astype(jnp.bfloat16), w2_ref[...],
                 preferred_element_type=jnp.float32) + b2_ref[...]
    a2 = jnp.maximum(a2, 0.0)
    a3 = jnp.dot(a2.astype(jnp.bfloat16), w3_ref[...],
                 preferred_element_type=jnp.float32) + b3_ref[...]
    a3 = jnp.maximum(a3, 0.0)

    # R5: output layer (N=C=1) as VPU multiply + lane reduce instead of an MXU
    # pass that would use 1/128 (v5e) to 1/256 (v6e/v7x) of the lanes.
    n3 = wo_t_ref.shape[1]
    cols = []
    for ci in range(C):
        wo_b = jnp.broadcast_to(wo_t_ref[ci:ci + 1, :], (BT, n3))
        cols.append(jnp.sum(a3 * wo_b, axis=-1, keepdims=True))
    res = cols[0] if C == 1 else jnp.concatenate(cols, axis=-1)
    out_ref[...] = res + bo_ref[...]


def lstm_forward(x_btd, params):
    """x_btd: (B, T, D) float32, batch_first like the PyTorch module."""
    B, T, D = x_btd.shape
    C = params["bo"].shape[1]

    BT = 8                                    # batch rows per grid tile (sublane granule)
    ntiles = -(-B // BT)
    Bpad = ntiles * BT

    x_pad = jnp.zeros((Bpad, T, D), jnp.float32).at[:B].set(x_btd)
    # Per-tile, time-major, flat rows: tile i, time t, row b -> row ((i*T)+t)*BT + b.
    x_tiles = (x_pad.reshape(ntiles, BT, T, D)
               .transpose(0, 2, 1, 3)
               .reshape(ntiles * T * BT, D))

    # R6: one-time bf16 cast of the big head weights (f32 accumulation in-kernel).
    w2_bf = params["w2"].astype(jnp.bfloat16)
    w3_bf = params["w3"].astype(jnp.bfloat16)
    wo_t = params["wo"].T                     # (C, 128) row layout for the lane reduce

    args = (
        x_tiles,
        params["w_ih_t"], params["w_hh_t"], params["b_lstm"],
        params["w1"], params["b1"],
        w2_bf, params["b2"],
        w3_bf, params["b3"],
        wo_t, params["bo"],
    )

    def const2d(a):
        # R7: whole-array block with a constant index_map -> DMA'd once and kept
        # VMEM-resident across all grid steps.
        return pl.BlockSpec(a.shape, lambda i: (0, 0))

    in_specs = ([pl.BlockSpec((T * BT, D), lambda i: (i, 0))]
                + [const2d(a) for a in args[1:]])
    out_specs = pl.BlockSpec((BT, C), lambda i: (i, 0))

    out = pl.pallas_call(
        functools.partial(_lstm_mlp_kernel, seq_len=T),
        out_shape=jax.ShapeDtypeStruct((Bpad, C), jnp.float32),
        grid=(ntiles,),
        in_specs=in_specs,
        out_specs=out_specs,
        compiler_params=pltpu.CompilerParams(
            # R8: batch tiles are independent -> v7x's two TensorCores split them.
            dimension_semantics=("parallel",)),
    )(*args)
    return out[:B]


def init_params(key, input_size, hidden_size, num_classes):
    """Deterministic parameter init matching the PyTorch module's shapes."""
    ks = jax.random.split(key, 12)
    H, D = hidden_size, input_size
    s = 1.0 / jnp.sqrt(jnp.float32(H))

    def u(k, shape, scale):
        return jax.random.uniform(k, shape, jnp.float32, -scale, scale)

    w_ih = u(ks[0], (4 * H, D), s)          # PyTorch weight_ih_l0
    w_hh = u(ks[1], (4 * H, H), s)          # PyTorch weight_hh_l0
    b_ih = u(ks[2], (4 * H,), s)
    b_hh = u(ks[3], (4 * H,), s)

    def linear(kw, kb, fan_in, fan_out):
        sc = 1.0 / jnp.sqrt(jnp.float32(fan_in))
        W = u(kw, (fan_out, fan_in), sc)    # PyTorch (out, in)
        b = u(kb, (fan_out,), sc)
        return W.T, b.reshape(1, fan_out)   # kernel wants (in, out), (1, out)

    w1, b1 = linear(ks[4], ks[5], H, 256)
    w2, b2 = linear(ks[6], ks[7], 256, 256)
    w3, b3 = linear(ks[8], ks[9], 256, 128)
    wo, bo = linear(ks[10], ks[11], 128, num_classes)

    return dict(
        w_ih_t=w_ih.T, w_hh_t=w_hh.T, b_lstm=(b_ih + b_hh).reshape(1, 4 * H),
        w1=w1, b1=b1, w2=w2, b2=b2, w3=w3, b3=b3, wo=wo, bo=bo,
    )


def reference_forward(x_btd, params):
    """Pure-JAX f32 reference of the same forward pass (for a sanity check)."""
    B, T, D = x_btd.shape
    H = params["w_hh_t"].shape[0]
    h = jnp.zeros((B, H), jnp.float32)
    c = jnp.zeros((B, H), jnp.float32)
    for t in range(T):
        gates = (x_btd[:, t, :] @ params["w_ih_t"] + h @ params["w_hh_t"]
                 + params["b_lstm"])
        i = jax.nn.sigmoid(gates[:, 0 * H:1 * H])
        f = jax.nn.sigmoid(gates[:, 1 * H:2 * H])
        g = jnp.tanh(gates[:, 2 * H:3 * H])
        o = jax.nn.sigmoid(gates[:, 3 * H:4 * H])
        c = f * c + i * g
        h = o * jnp.tanh(c)
    out = jax.nn.relu(h)
    out = jax.nn.relu(out @ params["w1"] + params["b1"])
    out = jax.nn.relu(out @ params["w2"] + params["b2"])
    out = jax.nn.relu(out @ params["w3"] + params["b3"])
    return out @ params["wo"] + params["bo"]


if __name__ == "__main__":
    # Module constants from the PyTorch script
    input_size = 19     # len(scale_cols)
    hidden_size = 2
    num_classes = 1
    batch = 4
    seq_length = 8

    key = jax.random.PRNGKey(0)
    k_x, k_p = jax.random.split(key)
    x = jax.random.normal(k_x, (batch, seq_length, input_size), jnp.float32)
    params = init_params(k_p, input_size, hidden_size, num_classes)

    out = lstm_forward(x, params)
    out = jax.block_until_ready(out)

    ref = reference_forward(x, params)
    assert out.shape == (batch, num_classes)
    # Tolerance accounts for the approx-reciprocal gate activations (~2^-12 rel)
    # and bf16 inputs to the two big head matmuls (~1e-3 rel), per the review.
    assert jnp.allclose(out, ref, atol=1e-2, rtol=1e-2), \
        f"max abs diff {jnp.max(jnp.abs(out - ref))}"

    print("KERNEL_OK")
</pallas_src>

<mosaic_0001>
module attributes {stable_mosaic.version = 11 : i64} {
  func.func @_lstm_mlp_kernel(%arg0: i32, %arg1: memref<64x19xf32, #tpu.memory_space<vmem>>, %arg2: memref<19x8xf32, #tpu.memory_space<vmem>>, %arg3: memref<2x8xf32, #tpu.memory_space<vmem>>, %arg4: memref<1x8xf32, #tpu.memory_space<vmem>>, %arg5: memref<2x256xf32, #tpu.memory_space<vmem>>, %arg6: memref<1x256xf32, #tpu.memory_space<vmem>>, %arg7: memref<256x256xbf16, #tpu.memory_space<vmem>>, %arg8: memref<1x256xf32, #tpu.memory_space<vmem>>, %arg9: memref<256x128xbf16, #tpu.memory_space<vmem>>, %arg10: memref<1x128xf32, #tpu.memory_space<vmem>>, %arg11: memref<1x128xf32, #tpu.memory_space<vmem>>, %arg12: memref<1x1xf32, #tpu.memory_space<vmem>>, %arg13: memref<8x1xf32, #tpu.memory_space<vmem>>) attributes {dimension_semantics = [#tpu.dimension_semantics<parallel>], iteration_bounds = array<i64: 1>, scalar_prefetch = 0 : i64, scratch_operands = 0 : i64, tpu.core_type = #tpu.core_type<tc>, window_params = [{transform_indices = @transform_0, window_bounds = array<i64: 64, 19>}, {pipeline_mode = #tpu.pipeline_mode<synchronous>, transform_indices = @transform_1, window_bounds = array<i64: 19, 8>}, {pipeline_mode = #tpu.pipeline_mode<synchronous>, transform_indices = @transform_2, window_bounds = array<i64: 2, 8>}, {pipeline_mode = #tpu.pipeline_mode<synchronous>, transform_indices = @transform_3, window_bounds = array<i64: 1, 8>}, {pipeline_mode = #tpu.pipeline_mode<synchronous>, transform_indices = @transform_4, window_bounds = array<i64: 2, 256>}, {pipeline_mode = #tpu.pipeline_mode<synchronous>, transform_indices = @transform_5, window_bounds = array<i64: 1, 256>}, {pipeline_mode = #tpu.pipeline_mode<synchronous>, transform_indices = @transform_6, window_bounds = array<i64: 256, 256>}, {pipeline_mode = #tpu.pipeline_mode<synchronous>, transform_indices = @transform_7, window_bounds = array<i64: 1, 256>}, {pipeline_mode = #tpu.pipeline_mode<synchronous>, transform_indices = @transform_8, window_bounds = array<i64: 256, 128>}, {pipeline_mode = #tpu.pipeline_mode<synchronous>, transform_indices = @transform_9, window_bounds = array<i64: 1, 128>}, {pipeline_mode = #tpu.pipeline_mode<synchronous>, transform_indices = @transform_10, window_bounds = array<i64: 1, 128>}, {pipeline_mode = #tpu.pipeline_mode<synchronous>, transform_indices = @transform_11, window_bounds = array<i64: 1, 1>}, {transform_indices = @transform_12, window_bounds = array<i64: 8, 1>}]} {
    %c0 = arith.constant 0 : index
    %c0_0 = arith.constant 0 : index
    %0 = vector.load %arg2[%c0, %c0_0] : memref<19x8xf32, #tpu.memory_space<vmem>>, vector<19x8xf32>
    %c0_1 = arith.constant 0 : index
    %c0_2 = arith.constant 0 : index
    %1 = vector.load %arg3[%c0_1, %c0_2] : memref<2x8xf32, #tpu.memory_space<vmem>>, vector<2x8xf32>
    %c0_3 = arith.constant 0 : index
    %c0_4 = arith.constant 0 : index
    %2 = vector.load %arg1[%c0_3, %c0_4] : memref<64x19xf32, #tpu.memory_space<vmem>>, vector<64x19xf32>
    %cst = arith.constant dense<0.000000e+00> : vector<64x8xf32>
    %3 = tpu.matmul %2, %0, %cst {dimension_numbers = #tpu.dot_dimension_numbers<[1], [0], [0], [1], [0, 0, 1, 1], [], []>} : vector<64x19xf32>, vector<19x8xf32>, vector<64x8xf32> -> vector<64x8xf32>
    %c0_5 = arith.constant 0 : index
    %c0_6 = arith.constant 0 : index
    %4 = vector.load %arg4[%c0_5, %c0_6] : memref<1x8xf32, #tpu.memory_space<vmem>>, vector<1x8xf32>
    %5 = vector.broadcast %4 : vector<1x8xf32> to vector<64x8xf32>
    %6 = arith.addf %3, %5 : vector<64x8xf32>
    %7 = vector.extract_strided_slice %1 {offsets = [0, 0], sizes = [1, 8], strides = [1, 1]} : vector<2x8xf32> to vector<1x8xf32>
    %8 = vector.shape_cast %7 : vector<1x8xf32> to vector<1x8xf32>
    %9 = vector.broadcast %8 : vector<1x8xf32> to vector<8x8xf32>
    %10 = vector.extract_strided_slice %1 {offsets = [1, 0], sizes = [1, 8], strides = [1, 1]} : vector<2x8xf32> to vector<1x8xf32>
    %11 = vector.shape_cast %10 : vector<1x8xf32> to vector<1x8xf32>
    %12 = vector.broadcast %11 : vector<1x8xf32> to vector<8x8xf32>
    %13 = tpu.iota {dimensions = array<i32: 1>} : vector<8x8xi32>
    %c4_i32 = arith.constant 4 : i32
    %14 = vector.broadcast %c4_i32 : i32 to vector<8x8xi32>
    %15 = arith.cmpi sge, %13, %14 : vector<8x8xi32>
    %c6_i32 = arith.constant 6 : i32
    %16 = vector.broadcast %c6_i32 : i32 to vector<8x8xi32>
    %17 = arith.cmpi slt, %13, %16 : vector<8x8xi32>
    %18 = arith.andi %15, %17 : vector<8x8xi1>
    %cst_7 = arith.constant 2.000000e+00 : f32
    %cst_8 = arith.constant 1.000000e+00 : f32
    %19 = vector.broadcast %cst_7 : f32 to vector<8x8xf32>
    %20 = vector.broadcast %cst_8 : f32 to vector<8x8xf32>
    %21 = arith.select %18, %19, %20 : vector<8x8xi1>, vector<8x8xf32>
    %cst_9 = arith.constant 1.000000e+00 : f32
    %cst_10 = arith.constant 0.000000e+00 : f32
    %22 = vector.broadcast %cst_9 : f32 to vector<8x8xf32>
    %23 = vector.broadcast %cst_10 : f32 to vector<8x8xf32>
    %24 = arith.select %18, %22, %23 : vector<8x8xi1>, vector<8x8xf32>
    %cst_11 = arith.constant 0.000000e+00 : f32
    %25 = vector.broadcast %cst_11 : f32 to vector<8x2xf32>
    %cst_12 = arith.constant 0.000000e+00 : f32
    %26 = vector.broadcast %cst_12 : f32 to vector<8x2xf32>
    %27 = vector.extract_strided_slice %6 {offsets = [0, 0], sizes = [8, 8], strides = [1, 1]} : vector<64x8xf32> to vector<8x8xf32>
    %28 = vector.extract_strided_slice %25 {offsets = [0, 0], sizes = [8, 1], strides = [1, 1]} : vector<8x2xf32> to vector<8x1xf32>
    %29 = vector.broadcast %28 : vector<8x1xf32> to vector<8x8xf32>
    %30 = arith.mulf %29, %9 : vector<8x8xf32>
    %31 = arith.addf %27, %30 : vector<8x8xf32>
    %32 = vector.extract_strided_slice %25 {offsets = [0, 1], sizes = [8, 1], strides = [1, 1]} : vector<8x2xf32> to vector<8x1xf32>
    %33 = vector.broadcast %32 : vector<8x1xf32> to vector<8x8xf32>
    %34 = arith.mulf %33, %12 : vector<8x8xf32>
    %35 = arith.addf %31, %34 : vector<8x8xf32>
    %36 = arith.mulf %35, %21 : vector<8x8xf32>
    %cst_13 = arith.constant 0.000000e+00 : f32
    %37 = vector.broadcast %cst_13 : f32 to vector<8x8xf32>
    %38 = arith.subf %37, %36 : vector<8x8xf32>
    %39 = math.exp %38 : vector<8x8xf32>
    %cst_14 = arith.constant 1.000000e+00 : f32
    %40 = vector.broadcast %cst_14 : f32 to vector<8x8xf32>
    %41 = arith.addf %40, %39 : vector<8x8xf32>
    %42 = tpu.reciprocal %41 {approx = true} : vector<8x8xf32> -> vector<8x8xf32>
    %43 = arith.mulf %42, %21 : vector<8x8xf32>
    %44 = arith.subf %43, %24 : vector<8x8xf32>
    %45 = vector.extract_strided_slice %44 {offsets = [0, 0], sizes = [8, 2], strides = [1, 1]} : vector<8x8xf32> to vector<8x2xf32>
    %46 = vector.extract_strided_slice %44 {offsets = [0, 2], sizes = [8, 2], strides = [1, 1]} : vector<8x8xf32> to vector<8x2xf32>
    %47 = vector.extract_strided_slice %44 {offsets = [0, 4], sizes = [8, 2], strides = [1, 1]} : vector<8x8xf32> to vector<8x2xf32>
    %48 = vector.extract_strided_slice %44 {offsets = [0, 6], sizes = [8, 2], strides = [1, 1]} : vector<8x8xf32> to vector<8x2xf32>
    %49 = arith.mulf %46, %26 : vector<8x2xf32>
    %50 = arith.mulf %45, %47 : vector<8x2xf32>
    %51 = arith.addf %49, %50 : vector<8x2xf32>
    %cst_15 = arith.constant -2.000000e+00 : f32
    %52 = vector.broadcast %cst_15 : f32 to vector<8x2xf32>
    %53 = arith.mulf %52, %51 : vector<8x2xf32>
    %54 = math.exp %53 : vector<8x2xf32>
    %cst_16 = arith.constant 1.000000e+00 : f32
    %55 = vector.broadcast %cst_16 : f32 to vector<8x2xf32>
    %56 = arith.addf %55, %54 : vector<8x2xf32>
    %57 = tpu.reciprocal %56 {approx = true} : vector<8x2xf32> -> vector<8x2xf32>
    %cst_17 = arith.constant 2.000000e+00 : f32
    %58 = vector.broadcast %cst_17 : f32 to vector<8x2xf32>
    %59 = arith.mulf %58, %57 : vector<8x2xf32>
    %cst_18 = arith.constant 1.000000e+00 : f32
    %60 = vector.broadcast %cst_18 : f32 to vector<8x2xf32>
    %61 = arith.subf %59, %60 : vector<8x2xf32>
    %62 = arith.mulf %48, %61 : vector<8x2xf32>
    %63 = vector.extract_strided_slice %6 {offsets = [8, 0], sizes = [8, 8], strides = [1, 1]} : vector<64x8xf32> to vector<8x8xf32>
    %64 = vector.extract_strided_slice %62 {offsets = [0, 0], sizes = [8, 1], strides = [1, 1]} : vector<8x2xf32> to vector<8x1xf32>
    %65 = vector.broadcast %64 : vector<8x1xf32> to vector<8x8xf32>
    %66 = arith.mulf %65, %9 : vector<8x8xf32>
    %67 = arith.addf %63, %66 : vector<8x8xf32>
    %68 = vector.extract_strided_slice %62 {offsets = [0, 1], sizes = [8, 1], strides = [1, 1]} : vector<8x2xf32> to vector<8x1xf32>
    %69 = vector.broadcast %68 : vector<8x1xf32> to vector<8x8xf32>
    %70 = arith.mulf %69, %12 : vector<8x8xf32>
    %71 = arith.addf %67, %70 : vector<8x8xf32>
    %72 = arith.mulf %71, %21 : vector<8x8xf32>
    %cst_19 = arith.constant 0.000000e+00 : f32
    %73 = vector.broadcast %cst_19 : f32 to vector<8x8xf32>
    %74 = arith.subf %73, %72 : vector<8x8xf32>
    %75 = math.exp %74 : vector<8x8xf32>
    %cst_20 = arith.constant 1.000000e+00 : f32
    %76 = vector.broadcast %cst_20 : f32 to vector<8x8xf32>
    %77 = arith.addf %76, %75 : vector<8x8xf32>
    %78 = tpu.reciprocal %77 {approx = true} : vector<8x8xf32> -> vector<8x8xf32>
    %79 = arith.mulf %78, %21 : vector<8x8xf32>
    %80 = arith.subf %79, %24 : vector<8x8xf32>
    %81 = vector.extract_strided_slice %80 {offsets = [0, 0], sizes = [8, 2], strides = [1, 1]} : vector<8x8xf32> to vector<8x2xf32>
    %82 = vector.extract_strided_slice %80 {offsets = [0, 2], sizes = [8, 2], strides = [1, 1]} : vector<8x8xf32> to vector<8x2xf32>
    %83 = vector.extract_strided_slice %80 {offsets = [0, 4], sizes = [8, 2], strides = [1, 1]} : vector<8x8xf32> to vector<8x2xf32>
    %84 = vector.extract_strided_slice %80 {offsets = [0, 6], sizes = [8, 2], strides = [1, 1]} : vector<8x8xf32> to vector<8x2xf32>
    %85 = arith.mulf %82, %51 : vector<8x2xf32>
    %86 = arith.mulf %81, %83 : vector<8x2xf32>
    %87 = arith.addf %85, %86 : vector<8x2xf32>
    %cst_21 = arith.constant -2.000000e+00 : f32
    %88 = vector.broadcast %cst_21 : f32 to vector<8x2xf32>
    %89 = arith.mulf %88, %87 : vector<8x2xf32>
    %90 = math.exp %89 : vector<8x2xf32>
    %cst_22 = arith.constant 1.000000e+00 : f32
    %91 = vector.broadcast %cst_22 : f32 to vector<8x2xf32>
    %92 = arith.addf %91, %90 : vector<8x2xf32>
    %93 = tpu.reciprocal %92 {approx = true} : vector<8x2xf32> -> vector<8x2xf32>
    %cst_23 = arith.constant 2.000000e+00 : f32
    %94 = vector.broadcast %cst_23 : f32 to vector<8x2xf32>
    %95 = arith.mulf %94, %93 : vector<8x2xf32>
    %cst_24 = arith.constant 1.000000e+00 : f32
    %96 = vector.broadcast %cst_24 : f32 to vector<8x2xf32>
    %97 = arith.subf %95, %96 : vector<8x2xf32>
    %98 = arith.mulf %84, %97 : vector<8x2xf32>
    %99 = vector.extract_strided_slice %6 {offsets = [16, 0], sizes = [8, 8], strides = [1, 1]} : vector<64x8xf32> to vector<8x8xf32>
    %100 = vector.extract_strided_slice %98 {offsets = [0, 0], sizes = [8, 1], strides = [1, 1]} : vector<8x2xf32> to vector<8x1xf32>
    %101 = vector.broadcast %100 : vector<8x1xf32> to vector<8x8xf32>
    %102 = arith.mulf %101, %9 : vector<8x8xf32>
    %103 = arith.addf %99, %102 : vector<8x8xf32>
    %104 = vector.extract_strided_slice %98 {offsets = [0, 1], sizes = [8, 1], strides = [1, 1]} : vector<8x2xf32> to vector<8x1xf32>
    %105 = vector.broadcast %104 : vector<8x1xf32> to vector<8x8xf32>
    %106 = arith.mulf %105, %12 : vector<8x8xf32>
    %107 = arith.addf %103, %106 : vector<8x8xf32>
    %108 = arith.mulf %107, %21 : vector<8x8xf32>
    %cst_25 = arith.constant 0.000000e+00 : f32
    %109 = vector.broadcast %cst_25 : f32 to vector<8x8xf32>
    %110 = arith.subf %109, %108 : vector<8x8xf32>
    %111 = math.exp %110 : vector<8x8xf32>
    %cst_26 = arith.constant 1.000000e+00 : f32
    %112 = vector.broadcast %cst_26 : f32 to vector<8x8xf32>
    %113 = arith.addf %112, %111 : vector<8x8xf32>
    %114 = tpu.reciprocal %113 {approx = true} : vector<8x8xf32> -> vector<8x8xf32>
    %115 = arith.mulf %114, %21 : vector<8x8xf32>
    %116 = arith.subf %115, %24 : vector<8x8xf32>
    %117 = vector.extract_strided_slice %116 {offsets = [0, 0], sizes = [8, 2], strides = [1, 1]} : vector<8x8xf32> to vector<8x2xf32>
    %118 = vector.extract_strided_slice %116 {offsets = [0, 2], sizes = [8, 2], strides = [1, 1]} : vector<8x8xf32> to vector<8x2xf32>
    %119 = vector.extract_strided_slice %116 {offsets = [0, 4], sizes = [8, 2], strides = [1, 1]} : vector<8x8xf32> to vector<8x2xf32>
    %120 = vector.extract_strided_slice %116 {offsets = [0, 6], sizes = [8, 2], strides = [1, 1]} : vector<8x8xf32> to vector<8x2xf32>
    %121 = arith.mulf %118, %87 : vector<8x2xf32>
    %122 = arith.mulf %117, %119 : vector<8x2xf32>
    %123 = arith.addf %121, %122 : vector<8x2xf32>
    %cst_27 = arith.constant -2.000000e+00 : f32
    %124 = vector.broadcast %cst_27 : f32 to vector<8x2xf32>
    %125 = arith.mulf %124, %123 : vector<8x2xf32>
    %126 = math.exp %125 : vector<8x2xf32>
    %cst_28 = arith.constant 1.000000e+00 : f32
    %127 = vector.broadcast %cst_28 : f32 to vector<8x2xf32>
    %128 = arith.addf %127, %126 : vector<8x2xf32>
    %129 = tpu.reciprocal %128 {approx = true} : vector<8x2xf32> -> vector<8x2xf32>
    %cst_29 = arith.constant 2.000000e+00 : f32
    %130 = vector.broadcast %cst_29 : f32 to vector<8x2xf32>
    %131 = arith.mulf %130, %129 : vector<8x2xf32>
    %cst_30 = arith.constant 1.000000e+00 : f32
    %132 = vector.broadcast %cst_30 : f32 to vector<8x2xf32>
    %133 = arith.subf %131, %132 : vector<8x2xf32>
    %134 = arith.mulf %120, %133 : vector<8x2xf32>
    %135 = vector.extract_strided_slice %6 {offsets = [24, 0], sizes = [8, 8], strides = [1, 1]} : vector<64x8xf32> to vector<8x8xf32>
    %136 = vector.extract_strided_slice %134 {offsets = [0, 0], sizes = [8, 1], strides = [1, 1]} : vector<8x2xf32> to vector<8x1xf32>
    %137 = vector.broadcast %136 : vector<8x1xf32> to vector<8x8xf32>
    %138 = arith.mulf %137, %9 : vector<8x8xf32>
    %139 = arith.addf %135, %138 : vector<8x8xf32>
    %140 = vector.extract_strided_slice %134 {offsets = [0, 1], sizes = [8, 1], strides = [1, 1]} : vector<8x2xf32> to vector<8x1xf32>
    %141 = vector.broadcast %140 : vector<8x1xf32> to vector<8x8xf32>
    %142 = arith.mulf %141, %12 : vector<8x8xf32>
    %143 = arith.addf %139, %142 : vector<8x8xf32>
    %144 = arith.mulf %143, %21 : vector<8x8xf32>
    %cst_31 = arith.constant 0.000000e+00 : f32
    %145 = vector.broadcast %cst_31 : f32 to vector<8x8xf32>
    %146 = arith.subf %145, %144 : vector<8x8xf32>
    %147 = math.exp %146 : vector<8x8xf32>
    %cst_32 = arith.constant 1.000000e+00 : f32
    %148 = vector.broadcast %cst_32 : f32 to vector<8x8xf32>
    %149 = arith.addf %148, %147 : vector<8x8xf32>
    %150 = tpu.reciprocal %149 {approx = true} : vector<8x8xf32> -> vector<8x8xf32>
    %151 = arith.mulf %150, %21 : vector<8x8xf32>
    %152 = arith.subf %151, %24 : vector<8x8xf32>
    %153 = vector.extract_strided_slice %152 {offsets = [0, 0], sizes = [8, 2], strides = [1, 1]} : vector<8x8xf32> to vector<8x2xf32>
    %154 = vector.extract_strided_slice %152 {offsets = [0, 2], sizes = [8, 2], strides = [1, 1]} : vector<8x8xf32> to vector<8x2xf32>
    %155 = vector.extract_strided_slice %152 {offsets = [0, 4], sizes = [8, 2], strides = [1, 1]} : vector<8x8xf32> to vector<8x2xf32>
    %156 = vector.extract_strided_slice %152 {offsets = [0, 6], sizes = [8, 2], strides = [1, 1]} : vector<8x8xf32> to vector<8x2xf32>
    %157 = arith.mulf %154, %123 : vector<8x2xf32>
    %158 = arith.mulf %153, %155 : vector<8x2xf32>
    %159 = arith.addf %157, %158 : vector<8x2xf32>
    %cst_33 = arith.constant -2.000000e+00 : f32
    %160 = vector.broadcast %cst_33 : f32 to vector<8x2xf32>
    %161 = arith.mulf %160, %159 : vector<8x2xf32>
    %162 = math.exp %161 : vector<8x2xf32>
    %cst_34 = arith.constant 1.000000e+00 : f32
    %163 = vector.broadcast %cst_34 : f32 to vector<8x2xf32>
    %164 = arith.addf %163, %162 : vector<8x2xf32>
    %165 = tpu.reciprocal %164 {approx = true} : vector<8x2xf32> -> vector<8x2xf32>
    %cst_35 = arith.constant 2.000000e+00 : f32
    %166 = vector.broadcast %cst_35 : f32 to vector<8x2xf32>
    %167 = arith.mulf %166, %165 : vector<8x2xf32>
    %cst_36 = arith.constant 1.000000e+00 : f32
    %168 = vector.broadcast %cst_36 : f32 to vector<8x2xf32>
    %169 = arith.subf %167, %168 : vector<8x2xf32>
    %170 = arith.mulf %156, %169 : vector<8x2xf32>
    %171 = vector.extract_strided_slice %6 {offsets = [32, 0], sizes = [8, 8], strides = [1, 1]} : vector<64x8xf32> to vector<8x8xf32>
    %172 = vector.extract_strided_slice %170 {offsets = [0, 0], sizes = [8, 1], strides = [1, 1]} : vector<8x2xf32> to vector<8x1xf32>
    %173 = vector.broadcast %172 : vector<8x1xf32> to vector<8x8xf32>
    %174 = arith.mulf %173, %9 : vector<8x8xf32>
    %175 = arith.addf %171, %174 : vector<8x8xf32>
    %176 = vector.extract_strided_slice %170 {offsets = [0, 1], sizes = [8, 1], strides = [1, 1]} : vector<8x2xf32> to vector<8x1xf32>
    %177 = vector.broadcast %176 : vector<8x1xf32> to vector<8x8xf32>
    %178 = arith.mulf %177, %12 : vector<8x8xf32>
    %179 = arith.addf %175, %178 : vector<8x8xf32>
    %180 = arith.mulf %179, %21 : vector<8x8xf32>
    %cst_37 = arith.constant 0.000000e+00 : f32
    %181 = vector.broadcast %cst_37 : f32 to vector<8x8xf32>
    %182 = arith.subf %181, %180 : vector<8x8xf32>
    %183 = math.exp %182 : vector<8x8xf32>
    %cst_38 = arith.constant 1.000000e+00 : f32
    %184 = vector.broadcast %cst_38 : f32 to vector<8x8xf32>
    %185 = arith.addf %184, %183 : vector<8x8xf32>
    %186 = tpu.reciprocal %185 {approx = true} : vector<8x8xf32> -> vector<8x8xf32>
    %187 = arith.mulf %186, %21 : vector<8x8xf32>
    %188 = arith.subf %187, %24 : vector<8x8xf32>
    %189 = vector.extract_strided_slice %188 {offsets = [0, 0], sizes = [8, 2], strides = [1, 1]} : vector<8x8xf32> to vector<8x2xf32>
    %190 = vector.extract_strided_slice %188 {offsets = [0, 2], sizes = [8, 2], strides = [1, 1]} : vector<8x8xf32> to vector<8x2xf32>
    %191 = vector.extract_strided_slice %188 {offsets = [0, 4], sizes = [8, 2], strides = [1, 1]} : vector<8x8xf32> to vector<8x2xf32>
    %192 = vector.extract_strided_slice %188 {offsets = [0, 6], sizes = [8, 2], strides = [1, 1]} : vector<8x8xf32> to vector<8x2xf32>
    %193 = arith.mulf %190, %159 : vector<8x2xf32>
    %194 = arith.mulf %189, %191 : vector<8x2xf32>
    %195 = arith.addf %193, %194 : vector<8x2xf32>
    %cst_39 = arith.constant -2.000000e+00 : f32
    %196 = vector.broadcast %cst_39 : f32 to vector<8x2xf32>
    %197 = arith.mulf %196, %195 : vector<8x2xf32>
    %198 = math.exp %197 : vector<8x2xf32>
    %cst_40 = arith.constant 1.000000e+00 : f32
    %199 = vector.broadcast %cst_40 : f32 to vector<8x2xf32>
    %200 = arith.addf %199, %198 : vector<8x2xf32>
    %201 = tpu.reciprocal %200 {approx = true} : vector<8x2xf32> -> vector<8x2xf32>
    %cst_41 = arith.constant 2.000000e+00 : f32
    %202 = vector.broadcast %cst_41 : f32 to vector<8x2xf32>
    %203 = arith.mulf %202, %201 : vector<8x2xf32>
    %cst_42 = arith.constant 1.000000e+00 : f32
    %204 = vector.broadcast %cst_42 : f32 to vector<8x2xf32>
    %205 = arith.subf %203, %204 : vector<8x2xf32>
    %206 = arith.mulf %192, %205 : vector<8x2xf32>
    %207 = vector.extract_strided_slice %6 {offsets = [40, 0], sizes = [8, 8], strides = [1, 1]} : vector<64x8xf32> to vector<8x8xf32>
    %208 = vector.extract_strided_slice %206 {offsets = [0, 0], sizes = [8, 1], strides = [1, 1]} : vector<8x2xf32> to vector<8x1xf32>
    %209 = vector.broadcast %208 : vector<8x1xf32> to vector<8x8xf32>
    %210 = arith.mulf %209, %9 : vector<8x8xf32>
    %211 = arith.addf %207, %210 : vector<8x8xf32>
    %212 = vector.extract_strided_slice %206 {offsets = [0, 1], sizes = [8, 1], strides = [1, 1]} : vector<8x2xf32> to vector<8x1xf32>
    %213 = vector.broadcast %212 : vector<8x1xf32> to vector<8x8xf32>
    %214 = arith.mulf %213, %12 : vector<8x8xf32>
    %215 = arith.addf %211, %214 : vector<8x8xf32>
    %216 = arith.mulf %215, %21 : vector<8x8xf32>
    %cst_43 = arith.constant 0.000000e+00 : f32
    %217 = vector.broadcast %cst_43 : f32 to vector<8x8xf32>
    %218 = arith.subf %217, %216 : vector<8x8xf32>
    %219 = math.exp %218 : vector<8x8xf32>
    %cst_44 = arith.constant 1.000000e+00 : f32
    %220 = vector.broadcast %cst_44 : f32 to vector<8x8xf32>
    %221 = arith.addf %220, %219 : vector<8x8xf32>
    %222 = tpu.reciprocal %221 {approx = true} : vector<8x8xf32> -> vector<8x8xf32>
    %223 = arith.mulf %222, %21 : vector<8x8xf32>
    %224 = arith.subf %223, %24 : vector<8x8xf32>
    %225 = vector.extract_strided_slice %224 {offsets = [0, 0], sizes = [8, 2], strides = [1, 1]} : vector<8x8xf32> to vector<8x2xf32>
    %226 = vector.extract_strided_slice %224 {offsets = [0, 2], sizes = [8, 2], strides = [1, 1]} : vector<8x8xf32> to vector<8x2xf32>
    %227 = vector.extract_strided_slice %224 {offsets = [0, 4], sizes = [8, 2], strides = [1, 1]} : vector<8x8xf32> to vector<8x2xf32>
    %228 = vector.extract_strided_slice %224 {offsets = [0, 6], sizes = [8, 2], strides = [1, 1]} : vector<8x8xf32> to vector<8x2xf32>
    %229 = arith.mulf %226, %195 : vector<8x2xf32>
    %230 = arith.mulf %225, %227 : vector<8x2xf32>
    %231 = arith.addf %229, %230 : vector<8x2xf32>
    %cst_45 = arith.constant -2.000000e+00 : f32
    %232 = vector.broadcast %cst_45 : f32 to vector<8x2xf32>
    %233 = arith.mulf %232, %231 : vector<8x2xf32>
    %234 = math.exp %233 : vector<8x2xf32>
    %cst_46 = arith.constant 1.000000e+00 : f32
    %235 = vector.broadcast %cst_46 : f32 to vector<8x2xf32>
    %236 = arith.addf %235, %234 : vector<8x2xf32>
    %237 = tpu.reciprocal %236 {approx = true} : vector<8x2xf32> -> vector<8x2xf32>
    %cst_47 = arith.constant 2.000000e+00 : f32
    %238 = vector.broadcast %cst_47 : f32 to vector<8x2xf32>
    %239 = arith.mulf %238, %237 : vector<8x2xf32>
    %cst_48 = arith.constant 1.000000e+00 : f32
    %240 = vector.broadcast %cst_48 : f32 to vector<8x2xf32>
    %241 = arith.subf %239, %240 : vector<8x2xf32>
    %242 = arith.mulf %228, %241 : vector<8x2xf32>
    %243 = vector.extract_strided_slice %6 {offsets = [48, 0], sizes = [8, 8], strides = [1, 1]} : vector<64x8xf32> to vector<8x8xf32>
    %244 = vector.extract_strided_slice %242 {offsets = [0, 0], sizes = [8, 1], strides = [1, 1]} : vector<8x2xf32> to vector<8x1xf32>
    %245 = vector.broadcast %244 : vector<8x1xf32> to vector<8x8xf32>
    %246 = arith.mulf %245, %9 : vector<8x8xf32>
    %247 = arith.addf %243, %246 : vector<8x8xf32>
    %248 = vector.extract_strided_slice %242 {offsets = [0, 1], sizes = [8, 1], strides = [1, 1]} : vector<8x2xf32> to vector<8x1xf32>
    %249 = vector.broadcast %248 : vector<8x1xf32> to vector<8x8xf32>
    %250 = arith.mulf %249, %12 : vector<8x8xf32>
    %251 = arith.addf %247, %250 : vector<8x8xf32>
    %252 = arith.mulf %251, %21 : vector<8x8xf32>
    %cst_49 = arith.constant 0.000000e+00 : f32
    %253 = vector.broadcast %cst_49 : f32 to vector<8x8xf32>
    %254 = arith.subf %253, %252 : vector<8x8xf32>
    %255 = math.exp %254 : vector<8x8xf32>
    %cst_50 = arith.constant 1.000000e+00 : f32
    %256 = vector.broadcast %cst_50 : f32 to vector<8x8xf32>
    %257 = arith.addf %256, %255 : vector<8x8xf32>
    %258 = tpu.reciprocal %257 {approx = true} : vector<8x8xf32> -> vector<8x8xf32>
    %259 = arith.mulf %258, %21 : vector<8x8xf32>
    %260 = arith.subf %259, %24 : vector<8x8xf32>
    %261 = vector.extract_strided_slice %260 {offsets = [0, 0], sizes = [8, 2], strides = [1, 1]} : vector<8x8xf32> to vector<8x2xf32>
    %262 = vector.extract_strided_slice %260 {offsets = [0, 2], sizes = [8, 2], strides = [1, 1]} : vector<8x8xf32> to vector<8x2xf32>
    %263 = vector.extract_strided_slice %260 {offsets = [0, 4], sizes = [8, 2], strides = [1, 1]} : vector<8x8xf32> to vector<8x2xf32>
    %264 = vector.extract_strided_slice %260 {offsets = [0, 6], sizes = [8, 2], strides = [1, 1]} : vector<8x8xf32> to vector<8x2xf32>
    %265 = arith.mulf %262, %231 : vector<8x2xf32>
    %266 = arith.mulf %261, %263 : vector<8x2xf32>
    %267 = arith.addf %265, %266 : vector<8x2xf32>
    %cst_51 = arith.constant -2.000000e+00 : f32
    %268 = vector.broadcast %cst_51 : f32 to vector<8x2xf32>
    %269 = arith.mulf %268, %267 : vector<8x2xf32>
    %270 = math.exp %269 : vector<8x2xf32>
    %cst_52 = arith.constant 1.000000e+00 : f32
    %271 = vector.broadcast %cst_52 : f32 to vector<8x2xf32>
    %272 = arith.addf %271, %270 : vector<8x2xf32>
    %273 = tpu.reciprocal %272 {approx = true} : vector<8x2xf32> -> vector<8x2xf32>
    %cst_53 = arith.constant 2.000000e+00 : f32
    %274 = vector.broadcast %cst_53 : f32 to vector<8x2xf32>
    %275 = arith.mulf %274, %273 : vector<8x2xf32>
    %cst_54 = arith.constant 1.000000e+00 : f32
    %276 = vector.broadcast %cst_54 : f32 to vector<8x2xf32>
    %277 = arith.subf %275, %276 : vector<8x2xf32>
    %278 = arith.mulf %264, %277 : vector<8x2xf32>
    %279 = vector.extract_strided_slice %6 {offsets = [56, 0], sizes = [8, 8], strides = [1, 1]} : vector<64x8xf32> to vector<8x8xf32>
    %280 = vector.extract_strided_slice %278 {offsets = [0, 0], sizes = [8, 1], strides = [1, 1]} : vector<8x2xf32> to vector<8x1xf32>
    %281 = vector.broadcast %280 : vector<8x1xf32> to vector<8x8xf32>
    %282 = arith.mulf %281, %9 : vector<8x8xf32>
    %283 = arith.addf %279, %282 : vector<8x8xf32>
    %284 = vector.extract_strided_slice %278 {offsets = [0, 1], sizes = [8, 1], strides = [1, 1]} : vector<8x2xf32> to vector<8x1xf32>
    %285 = vector.broadcast %284 : vector<8x1xf32> to vector<8x8xf32>
    %286 = arith.mulf %285, %12 : vector<8x8xf32>
    %287 = arith.addf %283, %286 : vector<8x8xf32>
    %288 = arith.mulf %287, %21 : vector<8x8xf32>
    %cst_55 = arith.constant 0.000000e+00 : f32
    %289 = vector.broadcast %cst_55 : f32 to vector<8x8xf32>
    %290 = arith.subf %289, %288 : vector<8x8xf32>
    %291 = math.exp %290 : vector<8x8xf32>
    %cst_56 = arith.constant 1.000000e+00 : f32
    %292 = vector.broadcast %cst_56 : f32 to vector<8x8xf32>
    %293 = arith.addf %292, %291 : vector<8x8xf32>
    %294 = tpu.reciprocal %293 {approx = true} : vector<8x8xf32> -> vector<8x8xf32>
    %295 = arith.mulf %294, %21 : vector<8x8xf32>
    %296 = arith.subf %295, %24 : vector<8x8xf32>
    %297 = vector.extract_strided_slice %296 {offsets = [0, 0], sizes = [8, 2], strides = [1, 1]} : vector<8x8xf32> to vector<8x2xf32>
    %298 = vector.extract_strided_slice %296 {offsets = [0, 2], sizes = [8, 2], strides = [1, 1]} : vector<8x8xf32> to vector<8x2xf32>
    %299 = vector.extract_strided_slice %296 {offsets = [0, 4], sizes = [8, 2], strides = [1, 1]} : vector<8x8xf32> to vector<8x2xf32>
    %300 = vector.extract_strided_slice %296 {offsets = [0, 6], sizes = [8, 2], strides = [1, 1]} : vector<8x8xf32> to vector<8x2xf32>
    %301 = arith.mulf %298, %267 : vector<8x2xf32>
    %302 = arith.mulf %297, %299 : vector<8x2xf32>
    %303 = arith.addf %301, %302 : vector<8x2xf32>
    %cst_57 = arith.constant -2.000000e+00 : f32
    %304 = vector.broadcast %cst_57 : f32 to vector<8x2xf32>
    %305 = arith.mulf %304, %303 : vector<8x2xf32>
    %306 = math.exp %305 : vector<8x2xf32>
    %cst_58 = arith.constant 1.000000e+00 : f32
    %307 = vector.broadcast %cst_58 : f32 to vector<8x2xf32>
    %308 = arith.addf %307, %306 : vector<8x2xf32>
    %309 = tpu.reciprocal %308 {approx = true} : vector<8x2xf32> -> vector<8x2xf32>
    %cst_59 = arith.constant 2.000000e+00 : f32
    %310 = vector.broadcast %cst_59 : f32 to vector<8x2xf32>
    %311 = arith.mulf %310, %309 : vector<8x2xf32>
    %cst_60 = arith.constant 1.000000e+00 : f32
    %312 = vector.broadcast %cst_60 : f32 to vector<8x2xf32>
    %313 = arith.subf %311, %312 : vector<8x2xf32>
    %314 = arith.mulf %300, %313 : vector<8x2xf32>
    %cst_61 = arith.constant 0.000000e+00 : f32
    %315 = vector.broadcast %cst_61 : f32 to vector<8x2xf32>
    %316 = arith.maximumf %314, %315 : vector<8x2xf32>
    %c0_62 = arith.constant 0 : index
    %c0_63 = arith.constant 0 : index
    %317 = vector.load %arg6[%c0_62, %c0_63] : memref<1x256xf32, #tpu.memory_space<vmem>>, vector<1x256xf32>
    %318 = vector.shape_cast %317 : vector<1x256xf32> to vector<1x256xf32>
    %319 = vector.broadcast %318 : vector<1x256xf32> to vector<8x256xf32>
    %320 = vector.extract_strided_slice %316 {offsets = [0, 0], sizes = [8, 1], strides = [1, 1]} : vector<8x2xf32> to vector<8x1xf32>
    %c0_64 = arith.constant 0 : index
    %c0_65 = arith.constant 0 : index
    %321 = vector.load %arg5[%c0_64, %c0_65] : memref<2x256xf32, #tpu.memory_space<vmem>>, vector<1x256xf32>
    %322 = vector.shape_cast %321 : vector<1x256xf32> to vector<1x256xf32>
    %323 = vector.broadcast %322 : vector<1x256xf32> to vector<8x256xf32>
    %324 = vector.broadcast %320 : vector<8x1xf32> to vector<8x256xf32>
    %325 = arith.mulf %324, %323 : vector<8x256xf32>
    %326 = arith.addf %319, %325 : vector<8x256xf32>
    %327 = vector.extract_strided_slice %316 {offsets = [0, 1], sizes = [8, 1], strides = [1, 1]} : vector<8x2xf32> to vector<8x1xf32>
    %c1 = arith.constant 1 : index
    %c0_66 = arith.constant 0 : index
    %328 = vector.load %arg5[%c1, %c0_66] : memref<2x256xf32, #tpu.memory_space<vmem>>, vector<1x256xf32>
    %329 = vector.shape_cast %328 : vector<1x256xf32> to vector<1x256xf32>
    %330 = vector.broadcast %329 : vector<1x256xf32> to vector<8x256xf32>
    %331 = vector.broadcast %327 : vector<8x1xf32> to vector<8x256xf32>
    %332 = arith.mulf %331, %330 : vector<8x256xf32>
    %333 = arith.addf %326, %332 : vector<8x256xf32>
    %cst_67 = arith.constant 0.000000e+00 : f32
    %334 = vector.broadcast %cst_67 : f32 to vector<8x256xf32>
    %335 = arith.maximumf %333, %334 : vector<8x256xf32>
    %336 = arith.truncf %335 : vector<8x256xf32> to vector<8x256xbf16>
    %c0_68 = arith.constant 0 : index
    %c0_69 = arith.constant 0 : index
    %337 = vector.load %arg7[%c0_68, %c0_69] : memref<256x256xbf16, #tpu.memory_space<vmem>>, vector<256x256xbf16>
    %cst_70 = arith.constant dense<0.000000e+00> : vector<8x256xf32>
    %338 = tpu.matmul %336, %337, %cst_70 {dimension_numbers = #tpu.dot_dimension_numbers<[1], [0], [0], [1], [0, 0, 1, 1], [], []>} : vector<8x256xbf16>, vector<256x256xbf16>, vector<8x256xf32> -> vector<8x256xf32>
    %c0_71 = arith.constant 0 : index
    %c0_72 = arith.constant 0 : index
    %339 = vector.load %arg8[%c0_71, %c0_72] : memref<1x256xf32, #tpu.memory_space<vmem>>, vector<1x256xf32>
    %340 = vector.broadcast %339 : vector<1x256xf32> to vector<8x256xf32>
    %341 = arith.addf %338, %340 : vector<8x256xf32>
    %cst_73 = arith.constant 0.000000e+00 : f32
    %342 = vector.broadcast %cst_73 : f32 to vector<8x256xf32>
    %343 = arith.maximumf %341, %342 : vector<8x256xf32>
    %344 = arith.truncf %343 : vector<8x256xf32> to vector<8x256xbf16>
    %c0_74 = arith.constant 0 : index
    %c0_75 = arith.constant 0 : index
    %345 = vector.load %arg9[%c0_74, %c0_75] : memref<256x128xbf16, #tpu.memory_space<vmem>>, vector<256x128xbf16>
    %cst_76 = arith.constant dense<0.000000e+00> : vector<8x128xf32>
    %346 = tpu.matmul %344, %345, %cst_76 {dimension_numbers = #tpu.dot_dimension_numbers<[1], [0], [0], [1], [0, 0, 1, 1], [], []>} : vector<8x256xbf16>, vector<256x128xbf16>, vector<8x128xf32> -> vector<8x128xf32>
    %c0_77 = arith.constant 0 : index
    %c0_78 = arith.constant 0 : index
    %347 = vector.load %arg10[%c0_77, %c0_78] : memref<1x128xf32, #tpu.memory_space<vmem>>, vector<1x128xf32>
    %348 = vector.broadcast %347 : vector<1x128xf32> to vector<8x128xf32>
    %349 = arith.addf %346, %348 : vector<8x128xf32>
    %cst_79 = arith.constant 0.000000e+00 : f32
    %350 = vector.broadcast %cst_79 : f32 to vector<8x128xf32>
    %351 = arith.maximumf %349, %350 : vector<8x128xf32>
    %c0_80 = arith.constant 0 : index
    %c0_81 = arith.constant 0 : index
    %352 = vector.load %arg11[%c0_80, %c0_81] : memref<1x128xf32, #tpu.memory_space<vmem>>, vector<1x128xf32>
    %353 = vector.shape_cast %352 : vector<1x128xf32> to vector<1x128xf32>
    %354 = vector.broadcast %353 : vector<1x128xf32> to vector<8x128xf32>
    %355 = arith.mulf %351, %354 : vector<8x128xf32>
    %cst_82 = arith.constant dense<0.000000e+00> : vector<8xf32>
    %356 = vector.multi_reduction <add>, %355, %cst_82 [1] : vector<8x128xf32> to vector<8xf32>
    %357 = vector.shape_cast %356 : vector<8xf32> to vector<8x1xf32>
    %c0_83 = arith.constant 0 : index
    %c0_84 = arith.constant 0 : index
    %358 = vector.load %arg12[%c0_83, %c0_84] : memref<1x1xf32, #tpu.memory_space<vmem>>, vector<1x1xf32>
    %359 = vector.broadcast %358 : vector<1x1xf32> to vector<8x1xf32>
    %360 = arith.addf %357, %359 : vector<8x1xf32>
    %c0_85 = arith.constant 0 : index
    %c0_86 = arith.constant 0 : index
    %361 = vector.load %arg13[%c0_85, %c0_86] : memref<8x1xf32, #tpu.memory_space<vmem>>, vector<8x1xf32>
    tpu.vector_store %arg13[%c0_85, %c0_86], %360 {strides = array<i32>} : memref<8x1xf32, #tpu.memory_space<vmem>>, vector<8x1xf32>,
    return
  }
  func.func @transform_0(%arg0: i32) -> (i32, i32) {
    %c0_i32 = arith.constant 0 : i32
    %c0_i32_0 = arith.constant 0 : i32
    return %arg0, %c0_i32 : i32, i32
  }
  func.func @transform_1(%arg0: i32) -> (i32, i32) {
    %c0_i32 = arith.constant 0 : i32
    %c0_i32_0 = arith.constant 0 : i32
    %c0_i32_1 = arith.constant 0 : i32
    return %c0_i32, %c0_i32_0 : i32, i32
  }
  func.func @transform_2(%arg0: i32) -> (i32, i32) {
    %c0_i32 = arith.constant 0 : i32
    %c0_i32_0 = arith.constant 0 : i32
    %c0_i32_1 = arith.constant 0 : i32
    return %c0_i32, %c0_i32_0 : i32, i32
  }
  func.func @transform_3(%arg0: i32) -> (i32, i32) {
    %c0_i32 = arith.constant 0 : i32
    %c0_i32_0 = arith.constant 0 : i32
    %c0_i32_1 = arith.constant 0 : i32
    return %c0_i32, %c0_i32_0 : i32, i32
  }
  func.func @transform_4(%arg0: i32) -> (i32, i32) {
    %c0_i32 = arith.constant 0 : i32
    %c0_i32_0 = arith.constant 0 : i32
    %c0_i32_1 = arith.constant 0 : i32
    return %c0_i32, %c0_i32_0 : i32, i32
  }
  func.func @transform_5(%arg0: i32) -> (i32, i32) {
    %c0_i32 = arith.constant 0 : i32
    %c0_i32_0 = arith.constant 0 : i32
    %c0_i32_1 = arith.constant 0 : i32
    return %c0_i32, %c0_i32_0 : i32, i32
  }
  func.func @transform_6(%arg0: i32) -> (i32, i32) {
    %c0_i32 = arith.constant 0 : i32
    %c0_i32_0 = arith.constant 0 : i32
    %c0_i32_1 = arith.constant 0 : i32
    return %c0_i32, %c0_i32_0 : i32, i32
  }
  func.func @transform_7(%arg0: i32) -> (i32, i32) {
    %c0_i32 = arith.constant 0 : i32
    %c0_i32_0 = arith.constant 0 : i32
    %c0_i32_1 = arith.constant 0 : i32
    return %c0_i32, %c0_i32_0 : i32, i32
  }
  func.func @transform_8(%arg0: i32) -> (i32, i32) {
    %c0_i32 = arith.constant 0 : i32
    %c0_i32_0 = arith.constant 0 : i32
    %c0_i32_1 = arith.constant 0 : i32
    return %c0_i32, %c0_i32_0 : i32, i32
  }
  func.func @transform_9(%arg0: i32) -> (i32, i32) {
    %c0_i32 = arith.constant 0 : i32
    %c0_i32_0 = arith.constant 0 : i32
    %c0_i32_1 = arith.constant 0 : i32
    return %c0_i32, %c0_i32_0 : i32, i32
  }
  func.func @transform_10(%arg0: i32) -> (i32, i32) {
    %c0_i32 = arith.constant 0 : i32
    %c0_i32_0 = arith.constant 0 : i32
    %c0_i32_1 = arith.constant 0 : i32
    return %c0_i32, %c0_i32_0 : i32, i32
  }
  func.func @transform_11(%arg0: i32) -> (i32, i32) {
    %c0_i32 = arith.constant 0 : i32
    %c0_i32_0 = arith.constant 0 : i32
    %c0_i32_1 = arith.constant 0 : i32
    return %c0_i32, %c0_i32_0 : i32, i32
  }
  func.func @transform_12(%arg0: i32) -> (i32, i32) {
    %c0_i32 = arith.constant 0 : i32
    %c0_i32_0 = arith.constant 0 : i32
    return %arg0, %c0_i32 : i32, i32
  }
}

</mosaic_0001>

<bundles_post_ra>
// kernel: tpu_custom_call.1
= control target key start
LH: loop header
LB: loop body
LE: loop exit
PB: predicated region body
PF: predicated region fallthrough
CT: control target
= control target key end

     0   :  { %s1746_s0 = inlined_call_operand.vmem [shape: f32[64,19], index: 0, kind: input, shape index: {}]   ;;  %s1747_s1 = inlined_call_operand.vmem [shape: f32[19,8], index: 1, kind: input, shape index: {}]   ;;  %s1748_s2 = inlined_call_operand.vmem [shape: f32[2,8], index: 2, kind: input, shape index: {}]   ;;  %s1749_s3 = inlined_call_operand.hbm [shape: f32[1,8], index: 3, kind: input, shape index: {}]   ;;  %s1750_s4 = inlined_call_operand.vmem [shape: f32[2,256], index: 4, kind: input, shape index: {}]   ;;  %s1751_s5 = inlined_call_operand.vmem [shape: f32[1,256], index: 5, kind: input, shape index: {}]   ;;  %s1752_s6 = inlined_call_operand.hbm [shape: bf16[256,256], index: 6, kind: input, shape index: {}]   ;;  %s1753_s7 = inlined_call_operand.hbm [shape: f32[1,256], index: 7, kind: input, shape index: {}]   ;;  %s1754_s8 = inlined_call_operand.vmem [shape: bf16[256,128], index: 8, kind: input, shape index: {}]   ;;  %s1755_s9 = inlined_call_operand.vmem [shape: f32[1,128], index: 9, kind: input, shape index: {}]   ;;  %s1756_s10 = inlined_call_operand.vmem [shape: f32[1,128], index: 10, kind: input, shape index: {}]   ;;  %s1757_s11 = inlined_call_operand.<no memory space> [shape: f32[1,1], index: 11, kind: input, shape index: {}]   ;;  %s1758_s12 = inlined_call_operand.vmem [shape: f32[8,1], index: 12, kind: output, shape index: {}]  }
   0x1   :  { %v17_v0 = vstv %s1757_s11 }
   0x2   :  { %18 = vst [vmem:[#allocation2] sm:$0x1] %v17_v0 }
   0x3   :  { %19 = vsyncpa [#allocation4], 0 }
   0x4   :  { %20 = vsyncpa [#allocation6], 0  ;;  %s1436_s23 = smov [#allocation5]  }
   0x5   :  { %s46_s24 = sshll.u32 %s1436_s23, 4  ;;  %s47_s24 = int_to_ptr.vmem [resolvable:$true] %s46_s24 }
   0x6   :  { %s1380_s25 = scalar_lea.vmem %s47_s24, 4096  ;;  %p1385_p1 = scmp.lt.s32.totalorder %s47_s24, %s47_s24 }
   0x7   :  { %p1381_p0 = scmp.ne.s32.totalorder %s47_s24, %s1380_s25  ;;  %p1386_p2 = scmp.lt.s32.totalorder %s1380_s25, %s1380_s25 }
   0x9   :  { %p1387_p3 = por %p1386_p2, %p1385_p1 }
   0xb   :  { %p1388_p4 = pnand %p1387_p3, %p1381_p0 }
   0xd   :  { %1391 = shalt.err (!%p1388_p4)
}
   0xe   :  { %s1437_s26 = smov 128   ;;  %s1438_s27 = smov 8  }
   0xf   :  { %52 = dma.hbm_to_vmem [thread:$0]  %s1752_s6, 4096, %s47_s24, [#allocation6], %s1437_s26, %s1437_s26, %s1438_s27  }
  0x10   :  { %s1439_s11 = smov [#allocation3]   ;;  %s1440_s13 = smov [#allocation7]  }
  0x11   :  { %s33_s30 = sshll.u32 %s1439_s11, 4  ;;  %s59_s14 = sshll.u32 %s1440_s13, 4  ;;  %s34_s30 = int_to_ptr.vmem [resolvable:$true] %s33_s30  ;;  %s60_s14 = int_to_ptr.vmem [resolvable:$true] %s59_s14 }
  0x12   :  { %s1400_s15 = scalar_lea.vmem %s34_s30, 16  ;;  %s1404_s16 = scalar_lea.vmem %s34_s30, 32 }
  0x13   :  { %p1401_p5 = scmp.ne.s32.totalorder %s34_s30, %s1400_s15  ;;  %p1405_p6 = scmp.lt.s32.totalorder %s34_s30, %s34_s30 }
  0x14   :  { %p1406_p7 = scmp.lt.s32.totalorder %s1404_s16, %s1400_s15 }
  0x16   :  { %p1407_p8 = por %p1406_p7, %p1405_p6 }
  0x18   :  { %p1408_p9 = pnand %p1407_p8, %p1401_p5 }
  0x1a   :  { %1411 = shalt.err (!%p1408_p9)
}
  0x1b   :  { %36 = dma.hbm_to_vmem [thread:$0]  %s1749_s3, 16, %s34_s30, [#allocation4]  }
  0x1c   :  { %s1420_s19 = scalar_lea.vmem %s60_s14, 32  ;;  %p1425_p11 = scmp.lt.s32.totalorder %s60_s14, %s60_s14 }
  0x1d   :  { %p1421_p10 = scmp.ne.s32.totalorder %s60_s14, %s1420_s19  ;;  %p1426_p12 = scmp.lt.s32.totalorder %s1420_s19, %s1420_s19 }
  0x1f   :  { %p1427_p13 = por %p1426_p12, %p1425_p11 }
  0x21   :  { %p1428_p0 = pnand %p1427_p13, %p1421_p10 }
  0x23   :  { %1431 = shalt.err (!%p1428_p0)
}
  0x24   :  { %62 = dma.hbm_to_vmem [thread:$0]  %s1753_s7, 32, %s60_s14, [#allocation6]  }
  0x25   :  { %1432 = dma.done.wait [#allocation4], 16  }
  0x26   :  { %1433 = vsyncadd [#allocation4], 4294967280 }
  0x27   :  { %1434 = dma.done.wait [#allocation6], 4128  }
  0x28   :  { %1435 = vsyncadd [#allocation6], 4294963168  ;;  %vm125_vm0 = vcmask 1042432   ;;  %vm100_vm1 = vcmask 154624   ;;  %v83_v1 = vld [vmem:[%s1747_s1 + $0x10] sm:$0x7]  ;;  %v234_v6 = vlaneseq }
  0x29   :  { %v82_v2 = vld [vmem:[%s1747_s1 + $0x8] sm:$0xff]  ;;  %1205 = vmatprep.subr.msk.mxu0 %vm125_vm0, %v83_v1  ;;  %v81_v3 = vld [vmem:[%s1747_s1] sm:$0xff]  ;;  %v1441_v21 = vmov 1.0   ;;  %v1442_v30 = vmov 0.0   ;;  %s1444_s11 = smov 2   ;;  %v1445_v43 = vmov 7  }
  0x2a   :  { %v85_v4 = vld [vmem:[%s1746_s0] sm:$0xff]  ;;  %1206 = vmatpush3.msk.msra.mxu0 %vm125_vm0, %v83_v1  ;;  %v86_v5 = vld [vmem:[%s1746_s0 + $0x8] sm:$0xff]  ;;  %v235_v7 = vshrl.u32 %v234_v6, 7  ;;  %v243_v11 = vand.u32 127, %v234_v6  ;;  %1236 = vset.pattern.permute.xlu0 %v1445_v43  ;;  %v1446_v44 = vmov 6   ;;  %s1447_s30 = smov 4  }
  0x2b   :  { %1211 = vmatprep.mubr.msk.f32.mxu0 %vm100_vm1, %v85_v4  ;;  %1207 = vmatprep.subr.mxu0 %v82_v2  ;;  %v84_v9 = vld [vmem:[%s1748_s2] sm:$0x3]  ;;  %s1443_s2 = smov 124   ;;  %v88_v4 = vld [vmem:[%s1746_s0 + $0x18] sm:$0xff]  ;;  %vm1094_vm5 = vcmask 7168  }
  0x2c   :  { %1208 = vmatpush3.msra.mxu0 %v82_v2  ;;  %v1542_v8 = vsub.s32 0, %v235_v7  ;;  %v1547_v10 = vsub.s32 1, %v235_v7  ;;  %vm244_vm2 = vcmp.ge.s32.totalorder %v243_v11, 4  ;;  %vm245_vm3 = vcmp.lt.s32.totalorder %v243_v11, 6  ;;  %v1556_v16 = vld [vmem:[#allocation3] ss:$0 sm:$0xff]  ;;  %1235 = vset.pattern.permute.xlu1 %v1446_v44 }
  0x2d   :  { %1209 = vmatprep.subr.mxu0 %v81_v3  ;;  %vm246_vm4 = vmand %vm244_vm2, %vm245_vm3 }
  0x2e   :  { %1210 = vmatpush3.msra.mxu0 %v81_v3  ;;  %v1550_v12 = vrot.slane %v84_v9, %v1542_v8  ;;  %v1553_v13 = vrot.slane %v84_v9, %v1547_v10  ;;  %v1560_v22 = vsel %vm246_vm4, 2.0, %v1441_v21  ;;  %v1563_v31 = vsel %vm246_vm4, 1.0, %v1442_v30  ;;  %v87_v3 = vld [vmem:[%s1746_s0 + $0x10] sm:$0xff] }
  0x2f   :  { %1212 = vmatmul.mubr.msk.f32.vlgmr.msra.gmra.mxu0 %vm100_vm1, %v86_v5 }
  0x30   :  { %v249_v15 = vmul.f32 0.0, %v1550_v12  ;;  %v251_v19 = vmul.f32 0.0, %v1553_v13  ;;  %1214 = vmatprep.mubr.msk.f32.mxu0 %vm100_vm1, %v87_v3 }
  0x33   :  { %1215 = vmatmul.mubr.msk.f32.gmra.mxu0 %vm100_vm1, %v88_v4 }
  0xef   :  { %v1213_v14 = vpop.f32.mrf.mxu0 }
  0xf0   :  { %v201_v52 = vadd.f32 %v1213_v14, %v1556_v16 }
  0xf1   :  { %v195_v17 = vpop.f32.mrf.mxu0 }
  0xf2   :  { %v196_v18 = vadd.f32 %v1556_v16, %v195_v17 }
  0xf4   :  { %v250_v20 = vadd.f32 %v249_v15, %v196_v18 }
  0xf6   :  { %v252_v23 = vadd.f32 %v251_v19, %v250_v20 }
  0xf8   :  { %v253_v24 = vmul.f32 %v252_v23, %v1560_v22  ;;  %v1216_v23 = vpop.f32.mrf.mxu0 }
  0xfa   :  { %v254_v25 = vsub.f32 0.0, %v253_v24  ;;  %v205_v24 = vpop.f32.mrf.mxu0 }
  0xfc   :  { %v255_v26 = vmul.f32 1.442695, %v254_v25 }
  0xfe   :  { %1308 = vpow2.f32 %v255_v26 }
 0x10b   :  { %v1309_v27 = vpop.eup %1308 }
 0x10c   :  { %v257_v28 = vadd.f32 1.0, %v1309_v27  ;;  %v206_v27 = vadd.f32 %v1556_v16, %v205_v24 }
 0x10e   :  { %1310 = vrcp.f32 %v257_v28 }
 0x11b   :  { %v1311_v29 = vpop.eup %1310 }
 0x11c   :  { %v259_v32 = vmul.f32 %v1311_v29, %v1560_v22 }
 0x11e   :  { %v260_v33 = vsub.f32 %v259_v32, %v1563_v31 }
 0x120   :  { %263 = vrot.lane.b32.xlu0 %v260_v33, %s1443_s2  ;;  %v261_v36 = vmul.f32 0.0, %v260_v33 }
 0x192   :  { %v264_v34 = vpop.permute.xlu0 %263 }
 0x193   :  { %v266_v35 = vmul.f32 %v264_v34, %v260_v33 }
 0x195   :  { %268 = vrot.lane.b32.xlu0 %v266_v35, %s1444_s11 }
 0x207   :  { %v269_v37 = vpop.permute.xlu0 %268 }
 0x208   :  { %v271_v38 = vadd.f32 %v269_v37, %v261_v36 }
 0x20a   :  { %v272_v39 = vmul.f32 -2.0, %v271_v38 }
 0x20c   :  { %v273_v40 = vmul.f32 1.442695, %v272_v39 }
 0x20e   :  { %1312 = vpow2.f32 %v273_v40 }
 0x21b   :  { %v1313_v41 = vpop.eup %1312 }
 0x21c   :  { %v275_v42 = vadd.f32 1.0, %v1313_v41 }
 0x21e   :  { %1314 = vrcp.f32 %v275_v42 }
 0x22b   :  { %v1315_v45 = vpop.eup %1314 }
 0x22c   :  { %v277_v46 = vmul.f32 2.0, %v1315_v45 }
 0x22e   :  { %v1112_v47 = vadd.f32 -1.0, %v277_v46 }
 0x230   :  { %280 = vrot.lane.b32.xlu1 %v1112_v47, %s1447_s30 }
 0x2a2   :  { %v281_v48 = vpop.permute.xlu1 %280 }
 0x2a3   :  { %v283_v49 = vmul.f32 %v281_v48, %v260_v33 }
 0x2a5   :  { %292 = vperm.xlu0 %1236, %v283_v49   ;;  %286 = vperm.xlu1 %1235, %v283_v49  }
 0x320   :  { %v293_v50 = vpop.permute.xlu0 %292  ;;  %v287_v51 = vpop.permute.xlu1 %286 }
 0x321   :  { %v289_v53 = vmul.f32 %v287_v51, %v1550_v12  ;;  %v295_v54 = vmul.f32 %v293_v50, %v1553_v13 }
 0x323   :  { %v290_v55 = vadd.f32 %v289_v53, %v201_v52 }
 0x325   :  { %v296_v56 = vadd.f32 %v295_v54, %v290_v55 }
 0x327   :  { %v297_v57 = vmul.f32 %v296_v56, %v1560_v22 }
 0x329   :  { %v298_v58 = vsub.f32 0.0, %v297_v57 }
 0x32b   :  { %v299_v59 = vmul.f32 1.442695, %v298_v58 }
 0x32d   :  { %1316 = vpow2.f32 %v299_v59  ;;  %v211_v59 = vadd.f32 %v1216_v23, %v1556_v16 }
 0x33a   :  { %v1317_v60 = vpop.eup %1316 }
 0x33b   :  { %v301_v61 = vadd.f32 1.0, %v1317_v60 }
 0x33d   :  { %1318 = vrcp.f32 %v301_v61 }
 0x34a   :  { %v1319_v62 = vpop.eup %1318 }
 0x34b   :  { %v303_v63 = vmul.f32 %v1319_v62, %v1560_v22 }
 0x34d   :  { %v304_v0 = vsub.f32 %v303_v63, %v1563_v31 }
 0x34f   :  { %307 = vrot.lane.b32.xlu1 %v304_v0, %s1443_s2  ;;  %v305_v5 = vmul.f32 %v304_v0, %v271_v38 }
 0x3c1   :  { %v308_v1 = vpop.permute.xlu1 %307 }
 0x3c2   :  { %v310_v2 = vmul.f32 %v308_v1, %v304_v0 }
 0x3c4   :  { %312 = vrot.lane.b32.xlu1 %v310_v2, %s1444_s11 }
 0x436   :  { %v313_v6 = vpop.permute.xlu1 %312 }
 0x437   :  { %v315_v7 = vadd.f32 %v313_v6, %v305_v5 }
 0x439   :  { %v316_v9 = vmul.f32 -2.0, %v315_v7 }
 0x43b   :  { %v317_v11 = vmul.f32 1.442695, %v316_v9 }
 0x43d   :  { %1320 = vpow2.f32 %v317_v11 }
 0x44a   :  { %v1321_v14 = vpop.eup %1320 }
 0x44b   :  { %v319_v15 = vadd.f32 1.0, %v1321_v14  ;;  %v89_v14 = vld [vmem:[%s1746_s0 + $0x20] sm:$0xff] }
 0x44c   :  { %1217 = vmatprep.mubr.msk.f32.mxu0 %vm100_vm1, %v89_v14 }
 0x44d   :  { %1322 = vrcp.f32 %v319_v15  ;;  %v90_v15 = vld [vmem:[%s1746_s0 + $0x28] sm:$0xff] }
 0x44e   :  { %1218 = vmatmul.mubr.msk.f32.gmra.mxu0 %vm100_vm1, %v90_v15 }
 0x45a   :  { %v1323_v17 = vpop.eup %1322 }
 0x45b   :  { %v321_v18 = vmul.f32 2.0, %v1323_v17 }
 0x45d   :  { %v1113_v19 = vadd.f32 -1.0, %v321_v18 }
 0x45f   :  { %324 = vrot.lane.b32.xlu0 %v1113_v19, %s1447_s30 }
 0x4d1   :  { %v325_v20 = vpop.permute.xlu0 %324 }
 0x4d2   :  { %v327_v21 = vmul.f32 %v325_v20, %v304_v0 }
 0x4d4   :  { %336 = vperm.xlu0 %1236, %v327_v21   ;;  %330 = vperm.xlu1 %1235, %v327_v21  }
 0x4d8   :  { %1237 = vset.pattern.permute.xlu0 %v1446_v44  ;;  %1238 = vset.pattern.permute.xlu1 %v1445_v43 }
 0x54f   :  { %v337_v25 = vpop.permute.xlu0 %336  ;;  %v331_v26 = vpop.permute.xlu1 %330 }
 0x550   :  { %v333_v28 = vmul.f32 %v331_v26, %v1550_v12  ;;  %v339_v29 = vmul.f32 %v337_v25, %v1553_v13 }
 0x552   :  { %v334_v30 = vadd.f32 %v333_v28, %v206_v27 }
 0x554   :  { %v340_v32 = vadd.f32 %v339_v29, %v334_v30  ;;  %v1219_v30 = vpop.f32.mrf.mxu0 }
 0x556   :  { %v341_v33 = vmul.f32 %v340_v32, %v1560_v22  ;;  %v215_v32 = vpop.f32.mrf.mxu0 }
 0x558   :  { %v342_v34 = vsub.f32 0.0, %v341_v33 }
 0x55a   :  { %v343_v35 = vmul.f32 1.442695, %v342_v34 }
 0x55c   :  { %1324 = vpow2.f32 %v343_v35  ;;  %v216_v35 = vadd.f32 %v1556_v16, %v215_v32 }
 0x569   :  { %v1325_v36 = vpop.eup %1324 }
 0x56a   :  { %v345_v37 = vadd.f32 1.0, %v1325_v36 }
 0x56c   :  { %1326 = vrcp.f32 %v345_v37 }
 0x579   :  { %v1327_v38 = vpop.eup %1326 }
 0x57a   :  { %v347_v39 = vmul.f32 %v1327_v38, %v1560_v22 }
 0x57c   :  { %v348_v40 = vsub.f32 %v347_v39, %v1563_v31 }
 0x57e   :  { %351 = vrot.lane.b32.xlu1 %v348_v40, %s1443_s2  ;;  %v349_v45 = vmul.f32 %v348_v40, %v315_v7 }
 0x5f0   :  { %v352_v41 = vpop.permute.xlu1 %351 }
 0x5f1   :  { %v354_v42 = vmul.f32 %v352_v41, %v348_v40 }
 0x5f3   :  { %356 = vrot.lane.b32.xlu0 %v354_v42, %s1444_s11 }
 0x665   :  { %v357_v46 = vpop.permute.xlu0 %356 }
 0x666   :  { %v359_v47 = vadd.f32 %v357_v46, %v349_v45 }
 0x668   :  { %v360_v48 = vmul.f32 -2.0, %v359_v47 }
 0x66a   :  { %v361_v49 = vmul.f32 1.442695, %v360_v48 }
 0x66c   :  { %1328 = vpow2.f32 %v361_v49 }
 0x679   :  { %v1329_v50 = vpop.eup %1328 }
 0x67a   :  { %v363_v51 = vadd.f32 1.0, %v1329_v50 }
 0x67c   :  { %1330 = vrcp.f32 %v363_v51 }
 0x689   :  { %v1331_v52 = vpop.eup %1330 }
 0x68a   :  { %v365_v53 = vmul.f32 2.0, %v1331_v52 }
 0x68c   :  { %v1114_v54 = vadd.f32 -1.0, %v365_v53 }
 0x68e   :  { %368 = vrot.lane.b32.xlu1 %v1114_v54, %s1447_s30 }
 0x700   :  { %v369_v55 = vpop.permute.xlu1 %368 }
 0x701   :  { %v371_v56 = vmul.f32 %v369_v55, %v348_v40 }
 0x703   :  { %380 = vperm.xlu1 %1238, %v371_v56   ;;  %374 = vperm.xlu0 %1237, %v371_v56  }
 0x77e   :  { %v381_v57 = vpop.permute.xlu1 %380  ;;  %v375_v58 = vpop.permute.xlu0 %374 }
 0x77f   :  { %v377_v60 = vmul.f32 %v375_v58, %v1550_v12  ;;  %v383_v61 = vmul.f32 %v381_v57, %v1553_v13 }
 0x781   :  { %v378_v62 = vadd.f32 %v377_v60, %v211_v59 }
 0x783   :  { %v384_v63 = vadd.f32 %v383_v61, %v378_v62 }
 0x785   :  { %v385_v0 = vmul.f32 %v384_v63, %v1560_v22 }
 0x787   :  { %v386_v1 = vsub.f32 0.0, %v385_v0 }
 0x789   :  { %v387_v2 = vmul.f32 1.442695, %v386_v1 }
 0x78b   :  { %1332 = vpow2.f32 %v387_v2  ;;  %v221_v2 = vadd.f32 %v1219_v30, %v1556_v16 }
 0x798   :  { %v1333_v3 = vpop.eup %1332 }
 0x799   :  { %v389_v4 = vadd.f32 1.0, %v1333_v3 }
 0x79b   :  { %1334 = vrcp.f32 %v389_v4 }
 0x7a8   :  { %v1335_v5 = vpop.eup %1334 }
 0x7a9   :  { %v391_v6 = vmul.f32 %v1335_v5, %v1560_v22 }
 0x7ab   :  { %v392_v7 = vsub.f32 %v391_v6, %v1563_v31 }
 0x7ad   :  { %395 = vrot.lane.b32.xlu1 %v392_v7, %s1443_s2  ;;  %v393_v17 = vmul.f32 %v392_v7, %v359_v47 }
 0x81f   :  { %v396_v9 = vpop.permute.xlu1 %395 }
 0x820   :  { %v398_v11 = vmul.f32 %v396_v9, %v392_v7 }
 0x822   :  { %400 = vrot.lane.b32.xlu0 %v398_v11, %s1444_s11 }
 0x894   :  { %v401_v18 = vpop.permute.xlu0 %400 }
 0x895   :  { %v403_v19 = vadd.f32 %v401_v18, %v393_v17 }
 0x897   :  { %v404_v20 = vmul.f32 -2.0, %v403_v19 }
 0x899   :  { %v405_v21 = vmul.f32 1.442695, %v404_v20 }
 0x89b   :  { %1336 = vpow2.f32 %v405_v21 }
 0x8a8   :  { %v1337_v23 = vpop.eup %1336 }
 0x8a9   :  { %v407_v24 = vadd.f32 1.0, %v1337_v23  ;;  %v91_v23 = vld [vmem:[%s1746_s0 + $0x30] sm:$0xff] }
 0x8aa   :  { %1220 = vmatprep.mubr.msk.f32.mxu0 %vm100_vm1, %v91_v23 }
 0x8ab   :  { %1338 = vrcp.f32 %v407_v24  ;;  %v92_v24 = vld [vmem:[%s1746_s0 + $0x38] sm:$0xff] }
 0x8ac   :  { %1221 = vmatmul.mubr.msk.f32.gmra.mxu0 %vm100_vm1, %v92_v24 }
 0x8b8   :  { %v1339_v25 = vpop.eup %1338 }
 0x8b9   :  { %v409_v26 = vmul.f32 2.0, %v1339_v25 }
 0x8bb   :  { %v1115_v27 = vadd.f32 -1.0, %v409_v26 }
 0x8bd   :  { %412 = vrot.lane.b32.xlu1 %v1115_v27, %s1447_s30 }
 0x92f   :  { %v413_v28 = vpop.permute.xlu1 %412 }
 0x930   :  { %v415_v29 = vmul.f32 %v413_v28, %v392_v7 }
 0x932   :  { %424 = vperm.xlu1 %1238, %v415_v29   ;;  %418 = vperm.xlu0 %1237, %v415_v29  }
 0x936   :  { %1239 = vset.pattern.permute.xlu1 %v1446_v44  ;;  %1240 = vset.pattern.permute.xlu0 %v1445_v43 }
 0x9ad   :  { %v425_v33 = vpop.permute.xlu1 %424  ;;  %v419_v34 = vpop.permute.xlu0 %418 }
 0x9ae   :  { %v421_v36 = vmul.f32 %v419_v34, %v1550_v12  ;;  %v427_v37 = vmul.f32 %v425_v33, %v1553_v13 }
 0x9b0   :  { %v422_v38 = vadd.f32 %v421_v36, %v216_v35 }
 0x9b2   :  { %v428_v39 = vadd.f32 %v427_v37, %v422_v38  ;;  %v1222_v38 = vpop.f32.mrf.mxu0 }
 0x9b4   :  { %v429_v40 = vmul.f32 %v428_v39, %v1560_v22  ;;  %v225_v39 = vpop.f32.mrf.mxu0 }
 0x9b6   :  { %v430_v41 = vsub.f32 0.0, %v429_v40 }
 0x9b8   :  { %v431_v42 = vmul.f32 1.442695, %v430_v41 }
 0x9ba   :  { %1340 = vpow2.f32 %v431_v42  ;;  %v226_v42 = vadd.f32 %v1556_v16, %v225_v39 }
 0x9c7   :  { %v1341_v45 = vpop.eup %1340 }
 0x9c8   :  { %v433_v46 = vadd.f32 1.0, %v1341_v45 }
 0x9ca   :  { %1342 = vrcp.f32 %v433_v46 }
 0x9d7   :  { %v1343_v47 = vpop.eup %1342 }
 0x9d8   :  { %v435_v48 = vmul.f32 %v1343_v47, %v1560_v22 }
 0x9da   :  { %v436_v49 = vsub.f32 %v435_v48, %v1563_v31 }
 0x9dc   :  { %439 = vrot.lane.b32.xlu0 %v436_v49, %s1443_s2  ;;  %v437_v52 = vmul.f32 %v436_v49, %v403_v19 }
 0xa4e   :  { %v440_v50 = vpop.permute.xlu0 %439 }
 0xa4f   :  { %v442_v51 = vmul.f32 %v440_v50, %v436_v49 }
 0xa51   :  { %444 = vrot.lane.b32.xlu1 %v442_v51, %s1444_s11 }
 0xac3   :  { %v445_v53 = vpop.permute.xlu1 %444 }
 0xac4   :  { %v447_v54 = vadd.f32 %v445_v53, %v437_v52 }
 0xac6   :  { %v448_v55 = vmul.f32 -2.0, %v447_v54 }
 0xac8   :  { %v449_v56 = vmul.f32 1.442695, %v448_v55 }
 0xaca   :  { %1344 = vpow2.f32 %v449_v56 }
 0xad7   :  { %v1345_v57 = vpop.eup %1344 }
 0xad8   :  { %v451_v58 = vadd.f32 1.0, %v1345_v57 }
 0xada   :  { %1346 = vrcp.f32 %v451_v58 }
 0xae7   :  { %v1347_v59 = vpop.eup %1346 }
 0xae8   :  { %v453_v60 = vmul.f32 2.0, %v1347_v59 }
 0xaea   :  { %v1116_v61 = vadd.f32 -1.0, %v453_v60 }
 0xaec   :  { %456 = vrot.lane.b32.xlu0 %v1116_v61, %s1447_s30 }
 0xb5e   :  { %v457_v62 = vpop.permute.xlu0 %456 }
 0xb5f   :  { %v459_v63 = vmul.f32 %v457_v62, %v436_v49 }
 0xb61   :  { %468 = vperm.xlu0 %1240, %v459_v63   ;;  %462 = vperm.xlu1 %1239, %v459_v63  }
 0xbdc   :  { %v469_v0 = vpop.permute.xlu0 %468  ;;  %v463_v1 = vpop.permute.xlu1 %462 }
 0xbdd   :  { %v465_v3 = vmul.f32 %v463_v1, %v1550_v12  ;;  %v471_v4 = vmul.f32 %v469_v0, %v1553_v13 }
 0xbdf   :  { %v466_v5 = vadd.f32 %v465_v3, %v221_v2 }
 0xbe1   :  { %v472_v6 = vadd.f32 %v471_v4, %v466_v5 }
 0xbe3   :  { %v473_v7 = vmul.f32 %v472_v6, %v1560_v22 }
 0xbe5   :  { %v474_v9 = vsub.f32 0.0, %v473_v7 }
 0xbe7   :  { %v475_v11 = vmul.f32 1.442695, %v474_v9  ;;  %v231_v9 = vadd.f32 %v1222_v38, %v1556_v16 }
 0xbe9   :  { %1348 = vpow2.f32 %v475_v11 }
 0xbf6   :  { %v1349_v14 = vpop.eup %1348 }
 0xbf7   :  { %v477_v15 = vadd.f32 1.0, %v1349_v14 }
 0xbf9   :  { %1350 = vrcp.f32 %v477_v15 }
 0xc06   :  { %v1351_v17 = vpop.eup %1350 }
 0xc07   :  { %v479_v18 = vmul.f32 %v1351_v17, %v1560_v22 }
 0xc09   :  { %v480_v19 = vsub.f32 %v479_v18, %v1563_v31 }
 0xc0b   :  { %483 = vrot.lane.b32.xlu1 %v480_v19, %s1443_s2  ;;  %v481_v25 = vmul.f32 %v480_v19, %v447_v54 }
 0xc7d   :  { %v484_v20 = vpop.permute.xlu1 %483 }
 0xc7e   :  { %v486_v21 = vmul.f32 %v484_v20, %v480_v19 }
 0xc80   :  { %488 = vrot.lane.b32.xlu1 %v486_v21, %s1444_s11 }
 0xcf2   :  { %v489_v26 = vpop.permute.xlu1 %488 }
 0xcf3   :  { %v491_v27 = vadd.f32 %v489_v26, %v481_v25 }
 0xcf5   :  { %v492_v28 = vmul.f32 -2.0, %v491_v27 }
 0xcf7   :  { %v493_v29 = vmul.f32 1.442695, %v492_v28 }
 0xcf9   :  { %1352 = vpow2.f32 %v493_v29 }
 0xd06   :  { %v1353_v30 = vpop.eup %1352 }
 0xd07   :  { %v495_v32 = vadd.f32 1.0, %v1353_v30 }
 0xd09   :  { %1354 = vrcp.f32 %v495_v32 }
 0xd16   :  { %v1355_v33 = vpop.eup %1354 }
 0xd17   :  { %v497_v34 = vmul.f32 2.0, %v1355_v33  ;;  %v1246_v33 = vld [vmem:[#allocation5 + $0x70] ss:$8 sps:$4 sm:$0xff]  }
 0xd19   :  { %v1117_v35 = vadd.f32 -1.0, %v497_v34  ;;  %v1247_v34 = vld [vmem:[#allocation5 + $0x64] ss:$8 sps:$4 sm:$0xff]  }
 0xd1b   :  { %500 = vrot.lane.b32.xlu0 %v1117_v35, %s1447_s30  ;;  %v1249_v35 = vld [vmem:[#allocation5 + $0x60] ss:$8 sps:$4 sm:$0xff]  }
 0xd8d   :  { %v501_v36 = vpop.permute.xlu0 %500 }
 0xd8e   :  { %v503_v37 = vmul.f32 %v501_v36, %v480_v19 }
 0xd90   :  { %512 = vperm.xlu0 %1240, %v503_v37   ;;  %506 = vperm.xlu1 %1239, %v503_v37   ;;  %v1250_v37 = vld [vmem:[#allocation5 + $0x54] ss:$8 sps:$4 sm:$0xff]  }
 0xd94   :  { %1241 = vset.pattern.permute.xlu0 %v1446_v44  ;;  %1242 = vset.pattern.permute.xlu1 %v1445_v43 }
 0xe0b   :  { %v513_v40 = vpop.permute.xlu0 %512  ;;  %v507_v41 = vpop.permute.xlu1 %506 }
 0xe0c   :  { %v509_v45 = vmul.f32 %v507_v41, %v1550_v12  ;;  %v515_v46 = vmul.f32 %v513_v40, %v1553_v13  ;;  %v1252_v40 = vld [vmem:[#allocation5 + $0x50] ss:$8 sps:$4 sm:$0xff]   ;;  %v1253_v41 = vld [vmem:[#allocation5 + $0x44] ss:$8 sps:$4 sm:$0xff]  }
 0xe0e   :  { %v510_v47 = vadd.f32 %v509_v45, %v226_v42  ;;  %v1255_v42 = vld [vmem:[#allocation5 + $0x40] ss:$8 sps:$4 sm:$0xff]   ;;  %v1256_v45 = vld [vmem:[#allocation5 + $0x34] ss:$8 sps:$4 sm:$0xff]  }
 0xe10   :  { %v516_v48 = vadd.f32 %v515_v46, %v510_v47  ;;  %v1258_v46 = vld [vmem:[#allocation5 + $0x30] ss:$8 sps:$4 sm:$0xff]   ;;  %v1259_v47 = vld [vmem:[#allocation5 + $0x24] ss:$8 sps:$4 sm:$0xff]  }
 0xe12   :  { %v517_v49 = vmul.f32 %v516_v48, %v1560_v22  ;;  %v1261_v48 = vld [vmem:[#allocation5 + $0x20] ss:$8 sps:$4 sm:$0xff]  }
 0xe14   :  { %v518_v50 = vsub.f32 0.0, %v517_v49  ;;  %v1262_v49 = vld [vmem:[#allocation5 + $0x14] ss:$8 sps:$4 sm:$0xff]  }
 0xe16   :  { %v519_v51 = vmul.f32 1.442695, %v518_v50  ;;  %v1264_v50 = vld [vmem:[#allocation5 + $0x10] ss:$8 sps:$4 sm:$0xff]  }
 0xe18   :  { %1356 = vpow2.f32 %v519_v51  ;;  %v1265_v51 = vld [vmem:[#allocation5 + $0x4] ss:$8 sps:$4 sm:$0xff]  }
 0xe25   :  { %v1357_v44 = vpop.eup %1356 }
 0xe26   :  { %v521_v52 = vadd.f32 1.0, %v1357_v44  ;;  %v1267_v44 = vld [vmem:[#allocation5] ss:$8 sps:$4 sm:$0xff]  }
 0xe28   :  { %1358 = vrcp.f32 %v521_v52  ;;  %v1268_v52 = vld [vmem:[#allocation5 + $0xf4] ss:$8 sps:$4 sm:$0xff]  }
 0xe35   :  { %v1359_v53 = vpop.eup %1358 }
 0xe36   :  { %v523_v54 = vmul.f32 %v1359_v53, %v1560_v22  ;;  %v1270_v53 = vld [vmem:[#allocation5 + $0xf0] ss:$8 sps:$4 sm:$0xff]  }
 0xe38   :  { %v524_v55 = vsub.f32 %v523_v54, %v1563_v31  ;;  %v1271_v54 = vld [vmem:[#allocation5 + $0xe4] ss:$8 sps:$4 sm:$0xff]  }
 0xe3a   :  { %527 = vrot.lane.b32.xlu1 %v524_v55, %s1443_s2  ;;  %v525_v58 = vmul.f32 %v524_v55, %v491_v27 }
 0xeac   :  { %v528_v56 = vpop.permute.xlu1 %527 }
 0xead   :  { %v530_v57 = vmul.f32 %v528_v56, %v524_v55  ;;  %v1274_v56 = vld [vmem:[#allocation5 + $0xd4] ss:$8 sps:$4 sm:$0xff]  }
 0xeaf   :  { %532 = vrot.lane.b32.xlu0 %v530_v57, %s1444_s11  ;;  %v1276_v57 = vld [vmem:[#allocation5 + $0xd0] ss:$8 sps:$4 sm:$0xff]  }
 0xf21   :  { %v533_v59 = vpop.permute.xlu0 %532 }
 0xf22   :  { %v535_v60 = vadd.f32 %v533_v59, %v525_v58  ;;  %v1277_v58 = vld [vmem:[#allocation5 + $0xc4] ss:$8 sps:$4 sm:$0xff]   ;;  %v1279_v59 = vld [vmem:[#allocation5 + $0xc0] ss:$8 sps:$4 sm:$0xff]  }
 0xf24   :  { %v536_v61 = vmul.f32 -2.0, %v535_v60 }
 0xf26   :  { %v537_v62 = vmul.f32 1.442695, %v536_v61  ;;  %v1282_v61 = vld [vmem:[#allocation5 + $0xb0] ss:$8 sps:$4 sm:$0xff]  }
 0xf28   :  { %1360 = vpow2.f32 %v537_v62  ;;  %v1283_v62 = vld [vmem:[#allocation5 + $0xa4] ss:$8 sps:$4 sm:$0xff]  }
 0xf35   :  { %v1361_v63 = vpop.eup %1360 }
 0xf36   :  { %v539_v0 = vadd.f32 1.0, %v1361_v63  ;;  %v1285_v63 = vld [vmem:[#allocation5 + $0xa0] ss:$8 sps:$4 sm:$0xff]  }
 0xf38   :  { %1362 = vrcp.f32 %v539_v0 }
 0xf45   :  { %v1363_v1 = vpop.eup %1362 }
 0xf46   :  { %v541_v2 = vmul.f32 2.0, %v1363_v1 }
 0xf48   :  { %v1118_v3 = vadd.f32 -1.0, %v541_v2  ;;  %v1286_v2 = vld [vmem:[#allocation5 + $0x94] ss:$8 sps:$4 sm:$0xff]  }
 0xf4a   :  { %544 = vrot.lane.b32.xlu1 %v1118_v3, %s1447_s30 }
 0xfbc   :  { %v545_v4 = vpop.permute.xlu1 %544 }
 0xfbd   :  { %v547_v5 = vmul.f32 %v545_v4, %v524_v55  ;;  %v1273_v55 = vld [vmem:[#allocation5 + $0xe0] ss:$8 sps:$4 sm:$0xff]   ;;  %v1288_v4 = vld [vmem:[#allocation5 + $0x90] ss:$8 sps:$4 sm:$0xff]  }
 0xfbf   :  { %556 = vperm.xlu1 %1242, %v547_v5   ;;  %550 = vperm.xlu0 %1241, %v547_v5   ;;  %v1289_v5 = vld [vmem:[#allocation5 + $0x84] ss:$8 sps:$4 sm:$0xff]  }
0x103a   :  { %v557_v6 = vpop.permute.xlu1 %556  ;;  %v551_v7 = vpop.permute.xlu0 %550 }
0x103b   :  { %v553_v11 = vmul.f32 %v551_v7, %v1550_v12  ;;  %v559_v14 = vmul.f32 %v557_v6, %v1553_v13  ;;  %v1291_v6 = vld [vmem:[#allocation5 + $0x80] ss:$8 sps:$4 sm:$0xff]   ;;  %v1292_v7 = vld [vmem:[%s1754_s8 + $0x78] sm:$0xff]  }
0x103c   :  { %1183 = vmatprep.subr.bf16.mxu0 %v1292_v7 }
0x103d   :  { %v554_v15 = vadd.f32 %v553_v11, %v231_v9  ;;  %v1293_v9 = vld [vmem:[%s1754_s8 + $0x38] sm:$0xff]   ;;  %v1294_v11 = vld [vmem:[%s1754_s8 + $0x70] sm:$0xff]  }
0x103e   :  { %1184 = vmatpush3.bf16.msra.mxu0 %v1293_v9 }
0x103f   :  { %v560_v17 = vadd.f32 %v559_v14, %v554_v15  ;;  %v1295_v14 = vld [vmem:[%s1754_s8 + $0x30] sm:$0xff]   ;;  %1185 = vmatprep.subr.bf16.mxu0 %v1294_v11  ;;  %v1297_v15 = vld [vmem:[%s1754_s8 + $0x28] sm:$0xff]  }
0x1041   :  { %v561_v18 = vmul.f32 %v560_v17, %v1560_v22  ;;  %v1298_v17 = vld [vmem:[%s1754_s8 + $0x60] sm:$0xff]  }
0x1042   :  { %1186 = vmatpush3.bf16.msra.mxu0 %v1295_v14 }
0x1043   :  { %v562_v19 = vsub.f32 0.0, %v561_v18  ;;  %v1299_v18 = vld [vmem:[%s1754_s8 + $0x20] sm:$0xff]  }
0x1045   :  { %v563_v20 = vmul.f32 1.442695, %v562_v19  ;;  %v1300_v19 = vld [vmem:[%s1754_s8 + $0x58] sm:$0xff]  }
0x1047   :  { %1364 = vpow2.f32 %v563_v20  ;;  %v1301_v20 = vld [vmem:[%s1754_s8 + $0x18] sm:$0xff]  }
0x1054   :  { %v1365_v21 = vpop.eup %1364 }
0x1055   :  { %v565_v23 = vadd.f32 1.0, %v1365_v21  ;;  %v1302_v21 = vld [vmem:[%s1754_s8 + $0x50] sm:$0xff]  }
0x1057   :  { %1366 = vrcp.f32 %v565_v23  ;;  %v1303_v23 = vld [vmem:[%s1754_s8 + $0x10] sm:$0xff]  }
0x1064   :  { %v1367_v24 = vpop.eup %1366 }
0x1065   :  { %v567_v25 = vmul.f32 %v1367_v24, %v1560_v22  ;;  %v605_v24 = vld [vmem:[%s1750_s4] ss:$2 sm:$0x3] }
0x1067   :  { %v1662_v26 = vsub.f32 %v567_v25, %v1563_v31  ;;  %v1244_v31 = vld [vmem:[#allocation5 + $0x74] ss:$8 sps:$4 sm:$0xff]  }
0x1068   :  { %855 = vmatprep.subr.bf16.mxu1 %v1244_v31  ;;  %v1120_v25 = vld [vmem:[%s1750_s4 + $0x1] ss:$2 sm:$0x3] }
0x1069   :  { %571 = vrot.lane.b32.xlu1 %v1662_v26, %s1443_s2  ;;  %v569_v16 = vmul.f32 %v1662_v26, %v535_v60  ;;  %856 = vmatpush1.bf16.msra.mxu1 %v1246_v33  ;;  %v1280_v60 = vld [vmem:[#allocation5 + $0xb4] ss:$8 sps:$4 sm:$0xff]  }
0x106a   :  { %857 = vmatprep.subr.bf16.mxu1 %v1247_v34 }
0x106d   :  { %858 = vmatpush1.bf16.msra.mxu1 %v1249_v35 }
0x106e   :  { %859 = vmatprep.subr.bf16.mxu1 %v1250_v37 }
0x1071   :  { %860 = vmatpush1.bf16.msra.mxu1 %v1252_v40 }
0x1072   :  { %861 = vmatprep.subr.bf16.mxu1 %v1253_v41 }
0x1075   :  { %862 = vmatpush1.bf16.msra.mxu1 %v1255_v42 }
0x1076   :  { %863 = vmatprep.subr.bf16.mxu1 %v1256_v45  ;;  %v1304_v45 = vld [vmem:[%s1754_s8 + $0x48] sm:$0xff]  }
0x1079   :  { %864 = vmatpush1.bf16.msra.mxu1 %v1258_v46  ;;  %v1305_v46 = vld [vmem:[%s1754_s8 + $0x8] sm:$0xff]  }
0x107a   :  { %865 = vmatprep.subr.bf16.mxu1 %v1259_v47  ;;  %v1306_v47 = vld [vmem:[%s1754_s8 + $0x40] sm:$0xff]  }
0x107d   :  { %866 = vmatpush1.bf16.msra.mxu1 %v1261_v48  ;;  %v1307_v48 = vld [vmem:[%s1754_s8] sm:$0xff]  }
0x107e   :  { %867 = vmatprep.subr.bf16.mxu1 %v1262_v49  ;;  %v683_v49 = vld [vmem:[#allocation7] sm:$0x3] }
0x1081   :  { %868 = vmatpush1.bf16.msra.mxu1 %v1264_v50  ;;  %v688_v50 = vrot.slane %v683_v49, %v1542_v8 }
0x1082   :  { %869 = vmatprep.subr.bf16.mxu1 %v1265_v51  ;;  %v692_v51 = vrot.slane %v683_v49, %v1547_v10 }
0x1085   :  { %870 = vmatpush1.bf16.msra.mxu1 %v1267_v44 }
0x1086   :  { %871 = vmatprep.subr.bf16.mxu1 %v1268_v52 }
0x1089   :  { %872 = vmatpush2.bf16.msra.mxu1 %v1270_v53 }
0x108a   :  { %873 = vmatprep.subr.bf16.mxu1 %v1271_v54 }
0x108d   :  { %874 = vmatpush2.bf16.msra.mxu1 %v1273_v55 }
0x108e   :  { %875 = vmatprep.subr.bf16.mxu1 %v1274_v56 }
0x1091   :  { %876 = vmatpush2.bf16.msra.mxu1 %v1276_v57 }
0x1092   :  { %877 = vmatprep.subr.bf16.mxu1 %v1277_v58 }
0x1095   :  { %878 = vmatpush2.bf16.msra.mxu1 %v1279_v59 }
0x1096   :  { %879 = vmatprep.subr.bf16.mxu1 %v1280_v60 }
0x1099   :  { %880 = vmatpush2.bf16.msra.mxu1 %v1282_v61 }
0x109a   :  { %881 = vmatprep.subr.bf16.mxu1 %v1283_v62  ;;  %v1153_v62 = vld [vmem:[%s1755_s9] ss:$0 sm:$0xff] }
0x109d   :  { %882 = vmatpush2.bf16.msra.mxu1 %v1285_v63 }
0x109e   :  { %883 = vmatprep.subr.bf16.mxu1 %v1286_v2  ;;  %v1170_v2 = vld [vmem:[%s1756_s10] ss:$0 sm:$0xff] }
0x10a1   :  { %884 = vmatpush2.bf16.msra.mxu1 %v1288_v4 }
0x10a2   :  { %885 = vmatprep.subr.bf16.mxu1 %v1289_v5  ;;  %v1171_v5 = vld [vmem:[#allocation2] ss:$0 sm:$0xff] }
0x10a5   :  { %886 = vmatpush2.bf16.msra.mxu1 %v1291_v6 }
0x10db   :  { %v572_v12 = vpop.permute.xlu1 %571 }
0x10dc   :  { %v574_v13 = vmul.f32 %v572_v12, %v1662_v26  ;;  %v610_v12 = vrot.slane %v605_v24, %v1542_v8 }
0x10de   :  { %576 = vrot.lane.b32.xlu0 %v574_v13, %s1444_s11  ;;  %v614_v13 = vrot.slane %v605_v24, %v1547_v10 }
0x1150   :  { %v577_v27 = vpop.permute.xlu0 %576 }
0x1151   :  { %v579_v28 = vadd.f32 %v577_v27, %v569_v16  ;;  %v632_v16 = vrot.slane %v1120_v25, %v1542_v8  ;;  %v636_v27 = vrot.slane %v1120_v25, %v1547_v10 }
0x1153   :  { %v580_v29 = vmul.f32 -2.0, %v579_v28 }
0x1155   :  { %v581_v30 = vmul.f32 1.442695, %v580_v29 }
0x1157   :  { %1368 = vpow2.f32 %v581_v30 }
0x1164   :  { %v1369_v32 = vpop.eup %1368 }
0x1165   :  { %v583_v22 = vadd.f32 1.0, %v1369_v32 }
0x1167   :  { %1370 = vrcp.f32 %v583_v22 }
0x1174   :  { %v1371_v36 = vpop.eup %1370 }
0x1175   :  { %v585_v38 = vmul.f32 2.0, %v1371_v36 }
0x1177   :  { %v1119_v39 = vadd.f32 -1.0, %v585_v38 }
0x1179   :  { %588 = vrot.lane.b32.xlu1 %v1119_v39, %s1447_s30 }
0x11eb   :  { %v589_v0 = vpop.permute.xlu1 %588 }
0x11ec   :  { %v591_v1 = vmul.f32 %v589_v0, %v1662_v26  ;;  %v593_v26 = vld [vmem:[%s1751_s5] sm:$0x3] }
0x11ed   :  { %v598_v28 = vrot.slane %v593_v26, %v1542_v8  ;;  %v602_v29 = vrot.slane %v593_v26, %v1547_v10 }
0x11ee   :  { %v592_v3 = vmax.f32 %v591_v1, 0.0 }
0x11f0   :  { %640 = vperm.xlu1 %1242, %v592_v3   ;;  %619 = vperm.xlu0 %1241, %v592_v3  }
0x11f4   :  { %1243 = vset.pattern.permute.xlu0 %v1445_v43  ;;  %v1296_v43 = vld [vmem:[%s1754_s8 + $0x68] sm:$0xff]  }
0x11f5   :  { %1187 = vmatprep.subr.bf16.mxu0 %v1296_v43 }
0x11f6   :  { %1188 = vmatpush3.bf16.msra.mxu0 %v1297_v15 }
0x11f7   :  { %1189 = vmatprep.subr.bf16.mxu0 %v1298_v17 }
0x11fa   :  { %1190 = vmatpush3.bf16.msra.mxu0 %v1299_v18 }
0x11fb   :  { %1191 = vmatprep.subr.bf16.mxu0 %v1300_v19 }
0x11fe   :  { %1192 = vmatpush3.bf16.msra.mxu0 %v1301_v20 }
0x11ff   :  { %1193 = vmatprep.subr.bf16.mxu0 %v1302_v21 }
0x1202   :  { %1194 = vmatpush3.bf16.msra.mxu0 %v1303_v23 }
0x1203   :  { %1195 = vmatprep.subr.bf16.mxu0 %v1304_v45 }
0x1206   :  { %1196 = vmatpush3.bf16.msra.mxu0 %v1305_v46 }
0x1207   :  { %1197 = vmatprep.subr.bf16.mxu0 %v1306_v47 }
0x120a   :  { %1198 = vmatpush3.bf16.msra.mxu0 %v1307_v48 }
0x126b   :  { %v641_v30 = vpop.permute.xlu1 %640  ;;  %v620_v32 = vpop.permute.xlu0 %619 }
0x126c   :  { %v622_v22 = vmul.f32 %v620_v32, %v610_v12  ;;  %v623_v31 = vmul.f32 %v620_v32, %v614_v13  ;;  %v643_v33 = vmul.f32 %v641_v30, %v632_v16  ;;  %v644_v34 = vmul.f32 %v641_v30, %v636_v27 }
0x126e   :  { %v624_v35 = vadd.f32 %v622_v22, %v598_v28  ;;  %v625_v36 = vadd.f32 %v623_v31, %v602_v29 }
0x1270   :  { %v646_v37 = vadd.f32 %v644_v34, %v625_v36  ;;  %v645_v38 = vadd.f32 %v643_v33, %v624_v35 }
0x1272   :  { %v648_v39 = vmax.f32 %v646_v37, 0.0  ;;  %v647_v40 = vmax.f32 %v645_v38, 0.0 }
0x1274   :  { %v650_v41 = vpack.c.bf16 %v648_v39, %v648_v39  ;;  %v649_v42 = vpack.c.bf16 %v647_v40, %v647_v40 }
0x1276   :  { %887 = vmatprep.mubr.bf16.mxu1 %v650_v41 }
0x1277   :  { %888 = vmatmul.mubr.bf16.vlgmr.msra.gmra.mxu1 %v649_v42 }
0x1337   :  { %v889_v44 = vpop.f32.mrf.mxu1 }
0x1338   :  { %v890_v52 = vadd.f32 %v889_v44, %v688_v50 }
0x1339   :  { %v891_v53 = vpop.f32.mrf.mxu1 }
0x133a   :  { %v892_v54 = vadd.f32 %v891_v53, %v692_v51  ;;  %v896_v55 = vmax.f32 %v890_v52, 0.0 }
0x133b   :  { %v893_v56 = vpop.f32.mrf.mxu1 }
0x133c   :  { %v897_v57 = vmax.f32 %v892_v54, 0.0  ;;  %v898_v60 = vpack.c.bf16 %v896_v55, %v896_v55 }
0x133d   :  { %v894_v58 = vpop.f32.mrf.mxu1 }
0x133e   :  { %v899_v59 = vpack.c.bf16 %v897_v57, %v897_v57 }
0x1340   :  { %1067 = vmatprep.mubr.bf16.mxu0 %v899_v59 }
0x1341   :  { %1068 = vmatmul.mubr.bf16.vlgmr.msra.gmra.mxu0 %v898_v60 }
0x1401   :  { %v1199_v61 = vpop.f32.mrf.mxu0 }
0x1403   :  { %v1200_v8 = vpop.f32.mrf.mxu0 }
0x1404   :  { %v1201_v63 = vadd.f32 %v1200_v8, %v1199_v61 }
0x1405   :  { %v1202_v10 = vpop.f32.mrf.mxu0 }
0x1406   :  { %v1070_v0 = vadd.f32 %v1201_v63, %v1153_v62 }
0x1407   :  { %v1203_v1 = vpop.f32.mrf.mxu0 }
0x1408   :  { %v1075_v3 = vmax.f32 %v1070_v0, 0.0 }
0x140a   :  { %v1083_v4 = vmul.f32 %v1170_v2, %v1075_v3 }
0x140c   :  { %1084 = vadd.xlane.f32.xlu0 %v1083_v4 }
0x1495   :  { %v1085_v6 = vpop.xlane.xlu0 %1084 }
0x1496   :  { %v1093_v7 = vadd.f32 %v1171_v5, %v1085_v6 }
0x1498   :  { %1095 = vst.msk [vmem:[%s1758_s12] sm:$0xff] %vm1094_vm5, %v1093_v7 }
0x1499   :  { %1100 = vsyncpa [#allocation4], 1 }
0x149a   :  { %1101 = vsyncpa [#allocation6], 1 }

</bundles_post_ra>
